<compile_context>
chip_gen: v5e
topology: v5e:2x2
jax: 0.10.0
libtpu: 0.0.40
codegen_flags: <defaults>
</compile_context>

<pallas_src>
import functools

import jax
import jax.numpy as jnp
import numpy as np
from jax.experimental import pallas as pl
from jax.experimental.pallas import tpu as pltpu


def _pick_block_batch(B, C, HW, itemsize=4, max_block_bytes=4 << 20):
    """Images per grid step: largest divisor of B whose activation block stays
    under max_block_bytes; keeps >= 2 grid steps when the batch allows so
    v7x's two TensorCores both get work."""
    bt = 1
    for cand in range(1, B + 1):
        if B % cand:
            continue
        if cand * C * HW * itemsize > max_block_bytes:
            break
        if B >= 4 and B // cand < 2:
            break
        bt = cand
    return bt


# ---------------------------------------------------------------------------
# Pallas kernel + wrapper
# ---------------------------------------------------------------------------
def causal_resblock(x, w1, b1, w2, b2, kernel_size=5, mxu_dtype=jnp.float32):
    """x: [B, C, H, W] f32.  w*: [Cout, Cin, kh, kw] (already masked + weight-normed).
    Returns x + conv2(relu(conv1(relu(x)))) with causal convs, same shape as x."""
    B, C, H, W = x.shape
    KH = kernel_size // 2 + 1          # 3 for kernel_size=5
    PAD = kernel_size // 2             # 2
    HW = H * W

    # Unmasked causal taps as (dr, dc) offsets: out[y, x] += w * in[y+dr, x+dc].
    taps = []
    for r in range(KH):
        for c in range(kernel_size):
            if r == KH - 1 and c > kernel_size // 2:   # zeroed by the causal mask
                continue
            taps.append((r - PAD, c - PAD))
    T = len(taps)                                      # 13 for kernel_size=5
    TC = T * C

    # K-stacked weight matrices [Cout, T*Cin]: column t*C+ci holds w[:, ci, tap t].
    def stack_w(w):
        cols = [w[:, :, dr + PAD, dc + PAD] for (dr, dc) in taps]   # each [Cout, Cin]
        return jnp.concatenate(cols, axis=1).astype(mxu_dtype)      # [Cout, T*Cin]

    w1m, w2m = stack_w(w1), stack_w(w2)
    b1v = b1.reshape(C, 1).astype(jnp.float32)
    b2v = b2.reshape(C, 1).astype(jnp.float32)

    # Host-precomputed per-tap validity masks on the flattened per-image row:
    # tap (dr, dc) is valid at (y, x) iff y+dr >= 0 and 0 <= x+dc < W.
    ys, xs = np.indices((H, W))
    masks_np = np.ones((T, HW), np.float32)
    trivial = []
    for t, (dr, dc) in enumerate(taps):
        m = np.ones((H, W), np.float32)
        if dr < 0:
            m *= (ys + dr >= 0)
        if dc < 0:
            m *= (xs + dc >= 0)
        if dc > 0:
            m *= (xs + dc <= W - 1)
        masks_np[t] = m.reshape(HW)
        trivial.append(bool(m.min() >= 1.0))
        s = dr * W + dc
        # Roll wrap-around safety (review concern): every tap must shift
        # backwards, and any tap that rolls at all must be masked so the
        # wrapped / cross-image lanes land only on masked (zeroed) pixels.
        assert s <= 0, f"non-causal tap shift {s}"
        assert s == 0 or not trivial[t], "rolled tap must carry a mask"

    Bt = _pick_block_batch(B, C, HW, itemsize=np.dtype(x.dtype).itemsize)
    N = Bt * HW
    masks = jnp.asarray(np.tile(masks_np, (1, Bt)))    # (T, Bt*HW), same mask per image

    def kernel(x_ref, m_ref, w1_ref, b1_ref, w2_ref, b2_ref, out_ref,
               stk_ref, h_ref):
        # x_ref/out_ref/h_ref: (C, N) blocks — channels on sublanes, pixels on lanes.
        # stk_ref: (T*C, N) K-stacked MXU operand (overwritten fully per conv).
        def conv(h, w_ref_, b_ref_, dst_ref):
            # Stage 1: one XLU roll (+ one mask multiply) per tap on the whole block.
            for t, (dr, dc) in enumerate(taps):
                s = dr * W + dc
                blk = h if s == 0 else pltpu.roll(h, -s, axis=1)
                if not trivial[t]:
                    blk = blk * m_ref[t, :].reshape(1, N)
                stk_ref[t * C:(t + 1) * C, :] = blk.astype(stk_ref.dtype)
            # Stage 2: single K-stacked MXU matmul [C, T*C] x [T*C, N] + bias.
            dst_ref[...] = (
                jnp.dot(w_ref_[...], stk_ref[...],
                        preferred_element_type=jnp.float32)
                + b_ref_[...])

        conv(jnp.maximum(x_ref[...], 0.0), w1_ref, b1_ref, h_ref)
        conv(jnp.maximum(h_ref[...], 0.0), w2_ref, b2_ref, h_ref)
        # residual add, one dense lane-wide store
        out_ref[...] = (x_ref[...] + h_ref[...]).astype(out_ref.dtype)

    # Lane-dense layout: [C, B*H*W] (channels x flattened batch*pixels).
    x2 = jnp.transpose(x, (1, 0, 2, 3)).reshape(C, B * HW)

    out2 = pl.pallas_call(
        kernel,
        out_shape=jax.ShapeDtypeStruct((C, B * HW), x.dtype),
        grid=(B // Bt,),
        in_specs=[
            pl.BlockSpec((C, N), lambda b: (0, b)),     # activations, Bt images/step
            pl.BlockSpec((T, N), lambda b: (0, 0)),     # per-tap masks, resident
            pl.BlockSpec((C, TC), lambda b: (0, 0)),    # conv1 weights (VMEM, resident)
            pl.BlockSpec((C, 1), lambda b: (0, 0)),     # conv1 bias
            pl.BlockSpec((C, TC), lambda b: (0, 0)),    # conv2 weights (VMEM, resident)
            pl.BlockSpec((C, 1), lambda b: (0, 0)),     # conv2 bias
        ],
        out_specs=pl.BlockSpec((C, N), lambda b: (0, b)),
        scratch_shapes=[
            pltpu.VMEM((TC, N), mxu_dtype),             # K-stacked MXU operand
            pltpu.VMEM((C, N), jnp.float32),            # conv output buffer
        ],
        compiler_params=pltpu.CompilerParams(dimension_semantics=("parallel",)),
    )(x2, masks, w1m, b1v, w2m, b2v)

    return jnp.transpose(out2.reshape(C, B, H, W), (1, 0, 2, 3))


# ---------------------------------------------------------------------------
# Deterministic parameter init (mirrors CausalConv.__init__ + weight_norm)
# ---------------------------------------------------------------------------
def init_causal_conv(key, dim, kernel_size):
    kh = kernel_size // 2 + 1
    v = jax.random.normal(key, (dim, dim, kh, kernel_size), jnp.float32)
    v = v / np.sqrt(float(kernel_size ** 2 * dim))
    # weight_norm(dim=0): w = g * v / ||v||, g initialized to ||v|| over dims (1,2,3)
    norm = jnp.sqrt(jnp.sum(v * v, axis=(1, 2, 3), keepdims=True))
    g = norm
    w = g * v / norm
    # causal mask (mask_present=False): last kernel row, columns > center -> 0
    mask = np.ones((dim, dim, kh, kernel_size), np.float32)
    mask[:, :, -1, kernel_size // 2 + 1:] = 0.0
    w = w * jnp.asarray(mask)
    b = jnp.zeros((dim,), jnp.float32)
    return w, b


# ---------------------------------------------------------------------------
# Pure-JAX reference (for correctness check)
# ---------------------------------------------------------------------------
def causal_conv_ref(x, w, b, kernel_size):
    p = kernel_size // 2
    y = jax.lax.conv_general_dilated(
        x, w, window_strides=(1, 1), padding=((p, p), (p, p)),
        dimension_numbers=("NCHW", "OIHW", "NCHW"),
        precision=jax.lax.Precision.HIGHEST)
    y = y + b[None, :, None, None]
    return y[:, :, :-p, :]


def resblock_ref(x, w1, b1, w2, b2, kernel_size):
    h = causal_conv_ref(jax.nn.relu(x), w1, b1, kernel_size)
    h = causal_conv_ref(jax.nn.relu(h), w2, b2, kernel_size)
    return x + h


# ---------------------------------------------------------------------------
if __name__ == "__main__":
    B, C, H, W = 2, 4, 16, 16
    KS = 5

    key = jax.random.PRNGKey(0)
    kx, k1, k2 = jax.random.split(key, 3)
    x = jax.random.normal(kx, (B, C, H, W), jnp.float32)
    w1, b1 = init_causal_conv(k1, C, KS)
    w2, b2 = init_causal_conv(k2, C, KS)

    run = jax.jit(functools.partial(causal_resblock, kernel_size=KS))
    out = jax.block_until_ready(run(x, w1, b1, w2, b2))

    ref = resblock_ref(x, w1, b1, w2, b2, KS)
    assert out.shape == x.shape and out.dtype == x.dtype
    max_err = float(jnp.max(jnp.abs(out - ref)))
    # f32 MXU path; use ~5e-2 instead if mxu_dtype=jnp.bfloat16 is enabled.
    assert max_err < 2e-3, f"mismatch vs reference: max abs err = {max_err}"

    print("KERNEL_OK")
</pallas_src>

<mosaic_0001>
module attributes {stable_mosaic.version = 11 : i64} {
  func.func @kernel(%arg0: i32, %arg1: memref<4x512xf32, #tpu.memory_space<vmem>>, %arg2: memref<13x512xf32, #tpu.memory_space<vmem>>, %arg3: memref<4x52xf32, #tpu.memory_space<vmem>>, %arg4: memref<4x1xf32, #tpu.memory_space<vmem>>, %arg5: memref<4x52xf32, #tpu.memory_space<vmem>>, %arg6: memref<4x1xf32, #tpu.memory_space<vmem>>, %arg7: memref<4x512xf32, #tpu.memory_space<vmem>>, %arg8: memref<52x512xf32, #tpu.memory_space<vmem>>, %arg9: memref<4x512xf32, #tpu.memory_space<vmem>>) attributes {dimension_semantics = [#tpu.dimension_semantics<parallel>], iteration_bounds = array<i64: 1>, scalar_prefetch = 0 : i64, scratch_operands = 2 : i64, tpu.core_type = #tpu.core_type<tc>, window_params = [{transform_indices = @transform_0, window_bounds = array<i64: 4, 512>}, {pipeline_mode = #tpu.pipeline_mode<synchronous>, transform_indices = @transform_1, window_bounds = array<i64: 13, 512>}, {pipeline_mode = #tpu.pipeline_mode<synchronous>, transform_indices = @transform_2, window_bounds = array<i64: 4, 52>}, {pipeline_mode = #tpu.pipeline_mode<synchronous>, transform_indices = @transform_3, window_bounds = array<i64: 4, 1>}, {pipeline_mode = #tpu.pipeline_mode<synchronous>, transform_indices = @transform_4, window_bounds = array<i64: 4, 52>}, {pipeline_mode = #tpu.pipeline_mode<synchronous>, transform_indices = @transform_5, window_bounds = array<i64: 4, 1>}, {transform_indices = @transform_6, window_bounds = array<i64: 4, 512>}]} {
    %c0 = arith.constant 0 : index
    %c0_0 = arith.constant 0 : index
    %0 = vector.load %arg1[%c0, %c0_0] : memref<4x512xf32, #tpu.memory_space<vmem>>, vector<4x512xf32>
    %cst = arith.constant 0.000000e+00 : f32
    %1 = vector.broadcast %cst : f32 to vector<4x512xf32>
    %2 = arith.maximumf %0, %1 : vector<4x512xf32>
    %c34_i32 = arith.constant 34 : i32
    %3 = tpu.dynamic_rotate %2 by %c34_i32 dim 1 : vector<4x512xf32>, i32 -> vector<4x512xf32>
    %c0_1 = arith.constant 0 : index
    %c0_2 = arith.constant 0 : index
    %4 = vector.load %arg2[%c0_1, %c0_2] : memref<13x512xf32, #tpu.memory_space<vmem>>, vector<1x512xf32>
    %5 = vector.shape_cast %4 : vector<1x512xf32> to vector<512xf32>
    %6 = vector.shape_cast %5 : vector<512xf32> to vector<1x512xf32>
    %7 = vector.broadcast %6 : vector<1x512xf32> to vector<4x512xf32>
    %8 = arith.mulf %3, %7 : vector<4x512xf32>
    %c0_3 = arith.constant 0 : index
    %c0_4 = arith.constant 0 : index
    %9 = vector.load %arg8[%c0_3, %c0_4] : memref<52x512xf32, #tpu.memory_space<vmem>>, vector<4x512xf32>
    tpu.vector_store %arg8[%c0_3, %c0_4], %8 {strides = array<i32>} : memref<52x512xf32, #tpu.memory_space<vmem>>, vector<4x512xf32>,
    %c33_i32 = arith.constant 33 : i32
    %10 = tpu.dynamic_rotate %2 by %c33_i32 dim 1 : vector<4x512xf32>, i32 -> vector<4x512xf32>
    %c1 = arith.constant 1 : index
    %c0_5 = arith.constant 0 : index
    %11 = vector.load %arg2[%c1, %c0_5] : memref<13x512xf32, #tpu.memory_space<vmem>>, vector<1x512xf32>
    %12 = vector.shape_cast %11 : vector<1x512xf32> to vector<512xf32>
    %13 = vector.shape_cast %12 : vector<512xf32> to vector<1x512xf32>
    %14 = vector.broadcast %13 : vector<1x512xf32> to vector<4x512xf32>
    %15 = arith.mulf %10, %14 : vector<4x512xf32>
    %c4 = arith.constant 4 : index
    %c0_6 = arith.constant 0 : index
    %16 = vector.load %arg8[%c4, %c0_6] : memref<52x512xf32, #tpu.memory_space<vmem>>, vector<4x512xf32>
    tpu.vector_store %arg8[%c4, %c0_6], %15 {strides = array<i32>} : memref<52x512xf32, #tpu.memory_space<vmem>>, vector<4x512xf32>,
    %c32_i32 = arith.constant 32 : i32
    %17 = tpu.dynamic_rotate %2 by %c32_i32 dim 1 : vector<4x512xf32>, i32 -> vector<4x512xf32>
    %c2 = arith.constant 2 : index
    %c0_7 = arith.constant 0 : index
    %18 = vector.load %arg2[%c2, %c0_7] : memref<13x512xf32, #tpu.memory_space<vmem>>, vector<1x512xf32>
    %19 = vector.shape_cast %18 : vector<1x512xf32> to vector<512xf32>
    %20 = vector.shape_cast %19 : vector<512xf32> to vector<1x512xf32>
    %21 = vector.broadcast %20 : vector<1x512xf32> to vector<4x512xf32>
    %22 = arith.mulf %17, %21 : vector<4x512xf32>
    %c8 = arith.constant 8 : index
    %c0_8 = arith.constant 0 : index
    %23 = vector.load %arg8[%c8, %c0_8] : memref<52x512xf32, #tpu.memory_space<vmem>>, vector<4x512xf32>
    tpu.vector_store %arg8[%c8, %c0_8], %22 {strides = array<i32>} : memref<52x512xf32, #tpu.memory_space<vmem>>, vector<4x512xf32>,
    %c31_i32 = arith.constant 31 : i32
    %24 = tpu.dynamic_rotate %2 by %c31_i32 dim 1 : vector<4x512xf32>, i32 -> vector<4x512xf32>
    %c3 = arith.constant 3 : index
    %c0_9 = arith.constant 0 : index
    %25 = vector.load %arg2[%c3, %c0_9] : memref<13x512xf32, #tpu.memory_space<vmem>>, vector<1x512xf32>
    %26 = vector.shape_cast %25 : vector<1x512xf32> to vector<512xf32>
    %27 = vector.shape_cast %26 : vector<512xf32> to vector<1x512xf32>
    %28 = vector.broadcast %27 : vector<1x512xf32> to vector<4x512xf32>
    %29 = arith.mulf %24, %28 : vector<4x512xf32>
    %c12 = arith.constant 12 : index
    %c0_10 = arith.constant 0 : index
    %30 = vector.load %arg8[%c12, %c0_10] : memref<52x512xf32, #tpu.memory_space<vmem>>, vector<4x512xf32>
    tpu.vector_store %arg8[%c12, %c0_10], %29 {strides = array<i32>} : memref<52x512xf32, #tpu.memory_space<vmem>>, vector<4x512xf32>,
    %c30_i32 = arith.constant 30 : i32
    %31 = tpu.dynamic_rotate %2 by %c30_i32 dim 1 : vector<4x512xf32>, i32 -> vector<4x512xf32>
    %c4_11 = arith.constant 4 : index
    %c0_12 = arith.constant 0 : index
    %32 = vector.load %arg2[%c4_11, %c0_12] : memref<13x512xf32, #tpu.memory_space<vmem>>, vector<1x512xf32>
    %33 = vector.shape_cast %32 : vector<1x512xf32> to vector<512xf32>
    %34 = vector.shape_cast %33 : vector<512xf32> to vector<1x512xf32>
    %35 = vector.broadcast %34 : vector<1x512xf32> to vector<4x512xf32>
    %36 = arith.mulf %31, %35 : vector<4x512xf32>
    %c16 = arith.constant 16 : index
    %c0_13 = arith.constant 0 : index
    %37 = vector.load %arg8[%c16, %c0_13] : memref<52x512xf32, #tpu.memory_space<vmem>>, vector<4x512xf32>
    tpu.vector_store %arg8[%c16, %c0_13], %36 {strides = array<i32>} : memref<52x512xf32, #tpu.memory_space<vmem>>, vector<4x512xf32>,
    %c18_i32 = arith.constant 18 : i32
    %38 = tpu.dynamic_rotate %2 by %c18_i32 dim 1 : vector<4x512xf32>, i32 -> vector<4x512xf32>
    %c5 = arith.constant 5 : index
    %c0_14 = arith.constant 0 : index
    %39 = vector.load %arg2[%c5, %c0_14] : memref<13x512xf32, #tpu.memory_space<vmem>>, vector<1x512xf32>
    %40 = vector.shape_cast %39 : vector<1x512xf32> to vector<512xf32>
    %41 = vector.shape_cast %40 : vector<512xf32> to vector<1x512xf32>
    %42 = vector.broadcast %41 : vector<1x512xf32> to vector<4x512xf32>
    %43 = arith.mulf %38, %42 : vector<4x512xf32>
    %c20 = arith.constant 20 : index
    %c0_15 = arith.constant 0 : index
    %44 = vector.load %arg8[%c20, %c0_15] : memref<52x512xf32, #tpu.memory_space<vmem>>, vector<4x512xf32>
    tpu.vector_store %arg8[%c20, %c0_15], %43 {strides = array<i32>} : memref<52x512xf32, #tpu.memory_space<vmem>>, vector<4x512xf32>,
    %c17_i32 = arith.constant 17 : i32
    %45 = tpu.dynamic_rotate %2 by %c17_i32 dim 1 : vector<4x512xf32>, i32 -> vector<4x512xf32>
    %c6 = arith.constant 6 : index
    %c0_16 = arith.constant 0 : index
    %46 = vector.load %arg2[%c6, %c0_16] : memref<13x512xf32, #tpu.memory_space<vmem>>, vector<1x512xf32>
    %47 = vector.shape_cast %46 : vector<1x512xf32> to vector<512xf32>
    %48 = vector.shape_cast %47 : vector<512xf32> to vector<1x512xf32>
    %49 = vector.broadcast %48 : vector<1x512xf32> to vector<4x512xf32>
    %50 = arith.mulf %45, %49 : vector<4x512xf32>
    %c24 = arith.constant 24 : index
    %c0_17 = arith.constant 0 : index
    %51 = vector.load %arg8[%c24, %c0_17] : memref<52x512xf32, #tpu.memory_space<vmem>>, vector<4x512xf32>
    tpu.vector_store %arg8[%c24, %c0_17], %50 {strides = array<i32>} : memref<52x512xf32, #tpu.memory_space<vmem>>, vector<4x512xf32>,
    %c16_i32 = arith.constant 16 : i32
    %52 = tpu.dynamic_rotate %2 by %c16_i32 dim 1 : vector<4x512xf32>, i32 -> vector<4x512xf32>
    %c7 = arith.constant 7 : index
    %c0_18 = arith.constant 0 : index
    %53 = vector.load %arg2[%c7, %c0_18] : memref<13x512xf32, #tpu.memory_space<vmem>>, vector<1x512xf32>
    %54 = vector.shape_cast %53 : vector<1x512xf32> to vector<512xf32>
    %55 = vector.shape_cast %54 : vector<512xf32> to vector<1x512xf32>
    %56 = vector.broadcast %55 : vector<1x512xf32> to vector<4x512xf32>
    %57 = arith.mulf %52, %56 : vector<4x512xf32>
    %c28 = arith.constant 28 : index
    %c0_19 = arith.constant 0 : index
    %58 = vector.load %arg8[%c28, %c0_19] : memref<52x512xf32, #tpu.memory_space<vmem>>, vector<4x512xf32>
    tpu.vector_store %arg8[%c28, %c0_19], %57 {strides = array<i32>} : memref<52x512xf32, #tpu.memory_space<vmem>>, vector<4x512xf32>,
    %c15_i32 = arith.constant 15 : i32
    %59 = tpu.dynamic_rotate %2 by %c15_i32 dim 1 : vector<4x512xf32>, i32 -> vector<4x512xf32>
    %c8_20 = arith.constant 8 : index
    %c0_21 = arith.constant 0 : index
    %60 = vector.load %arg2[%c8_20, %c0_21] : memref<13x512xf32, #tpu.memory_space<vmem>>, vector<1x512xf32>
    %61 = vector.shape_cast %60 : vector<1x512xf32> to vector<512xf32>
    %62 = vector.shape_cast %61 : vector<512xf32> to vector<1x512xf32>
    %63 = vector.broadcast %62 : vector<1x512xf32> to vector<4x512xf32>
    %64 = arith.mulf %59, %63 : vector<4x512xf32>
    %c32 = arith.constant 32 : index
    %c0_22 = arith.constant 0 : index
    %65 = vector.load %arg8[%c32, %c0_22] : memref<52x512xf32, #tpu.memory_space<vmem>>, vector<4x512xf32>
    tpu.vector_store %arg8[%c32, %c0_22], %64 {strides = array<i32>} : memref<52x512xf32, #tpu.memory_space<vmem>>, vector<4x512xf32>,
    %c14_i32 = arith.constant 14 : i32
    %66 = tpu.dynamic_rotate %2 by %c14_i32 dim 1 : vector<4x512xf32>, i32 -> vector<4x512xf32>
    %c9 = arith.constant 9 : index
    %c0_23 = arith.constant 0 : index
    %67 = vector.load %arg2[%c9, %c0_23] : memref<13x512xf32, #tpu.memory_space<vmem>>, vector<1x512xf32>
    %68 = vector.shape_cast %67 : vector<1x512xf32> to vector<512xf32>
    %69 = vector.shape_cast %68 : vector<512xf32> to vector<1x512xf32>
    %70 = vector.broadcast %69 : vector<1x512xf32> to vector<4x512xf32>
    %71 = arith.mulf %66, %70 : vector<4x512xf32>
    %c36 = arith.constant 36 : index
    %c0_24 = arith.constant 0 : index
    %72 = vector.load %arg8[%c36, %c0_24] : memref<52x512xf32, #tpu.memory_space<vmem>>, vector<4x512xf32>
    tpu.vector_store %arg8[%c36, %c0_24], %71 {strides = array<i32>} : memref<52x512xf32, #tpu.memory_space<vmem>>, vector<4x512xf32>,
    %c2_i32 = arith.constant 2 : i32
    %73 = tpu.dynamic_rotate %2 by %c2_i32 dim 1 : vector<4x512xf32>, i32 -> vector<4x512xf32>
    %c10 = arith.constant 10 : index
    %c0_25 = arith.constant 0 : index
    %74 = vector.load %arg2[%c10, %c0_25] : memref<13x512xf32, #tpu.memory_space<vmem>>, vector<1x512xf32>
    %75 = vector.shape_cast %74 : vector<1x512xf32> to vector<512xf32>
    %76 = vector.shape_cast %75 : vector<512xf32> to vector<1x512xf32>
    %77 = vector.broadcast %76 : vector<1x512xf32> to vector<4x512xf32>
    %78 = arith.mulf %73, %77 : vector<4x512xf32>
    %c40 = arith.constant 40 : index
    %c0_26 = arith.constant 0 : index
    %79 = vector.load %arg8[%c40, %c0_26] : memref<52x512xf32, #tpu.memory_space<vmem>>, vector<4x512xf32>
    tpu.vector_store %arg8[%c40, %c0_26], %78 {strides = array<i32>} : memref<52x512xf32, #tpu.memory_space<vmem>>, vector<4x512xf32>,
    %c1_i32 = arith.constant 1 : i32
    %80 = tpu.dynamic_rotate %2 by %c1_i32 dim 1 : vector<4x512xf32>, i32 -> vector<4x512xf32>
    %c11 = arith.constant 11 : index
    %c0_27 = arith.constant 0 : index
    %81 = vector.load %arg2[%c11, %c0_27] : memref<13x512xf32, #tpu.memory_space<vmem>>, vector<1x512xf32>
    %82 = vector.shape_cast %81 : vector<1x512xf32> to vector<512xf32>
    %83 = vector.shape_cast %82 : vector<512xf32> to vector<1x512xf32>
    %84 = vector.broadcast %83 : vector<1x512xf32> to vector<4x512xf32>
    %85 = arith.mulf %80, %84 : vector<4x512xf32>
    %c44 = arith.constant 44 : index
    %c0_28 = arith.constant 0 : index
    %86 = vector.load %arg8[%c44, %c0_28] : memref<52x512xf32, #tpu.memory_space<vmem>>, vector<4x512xf32>
    tpu.vector_store %arg8[%c44, %c0_28], %85 {strides = array<i32>} : memref<52x512xf32, #tpu.memory_space<vmem>>, vector<4x512xf32>,
    %c48 = arith.constant 48 : index
    %c0_29 = arith.constant 0 : index
    %87 = vector.load %arg8[%c48, %c0_29] : memref<52x512xf32, #tpu.memory_space<vmem>>, vector<4x512xf32>
    tpu.vector_store %arg8[%c48, %c0_29], %2 {strides = array<i32>} : memref<52x512xf32, #tpu.memory_space<vmem>>, vector<4x512xf32>,
    %c0_30 = arith.constant 0 : index
    %c0_31 = arith.constant 0 : index
    %88 = vector.load %arg3[%c0_30, %c0_31] : memref<4x52xf32, #tpu.memory_space<vmem>>, vector<4x52xf32>
    %c0_32 = arith.constant 0 : index
    %c0_33 = arith.constant 0 : index
    %89 = vector.load %arg8[%c0_32, %c0_33] : memref<52x512xf32, #tpu.memory_space<vmem>>, vector<52x512xf32>
    %cst_34 = arith.constant dense<0.000000e+00> : vector<4x512xf32>
    %90 = tpu.matmul %88, %89, %cst_34 {dimension_numbers = #tpu.dot_dimension_numbers<[1], [0], [0], [1], [0, 0, 1, 1], [], []>} : vector<4x52xf32>, vector<52x512xf32>, vector<4x512xf32> -> vector<4x512xf32>
    %c0_35 = arith.constant 0 : index
    %c0_36 = arith.constant 0 : index
    %91 = vector.load %arg4[%c0_35, %c0_36] : memref<4x1xf32, #tpu.memory_space<vmem>>, vector<4x1xf32>
    %92 = vector.broadcast %91 : vector<4x1xf32> to vector<4x512xf32>
    %93 = arith.addf %90, %92 : vector<4x512xf32>
    %c0_37 = arith.constant 0 : index
    %c0_38 = arith.constant 0 : index
    %94 = vector.load %arg9[%c0_37, %c0_38] : memref<4x512xf32, #tpu.memory_space<vmem>>, vector<4x512xf32>
    tpu.vector_store %arg9[%c0_37, %c0_38], %93 {strides = array<i32>} : memref<4x512xf32, #tpu.memory_space<vmem>>, vector<4x512xf32>,
    %c0_39 = arith.constant 0 : index
    %c0_40 = arith.constant 0 : index
    %95 = vector.load %arg9[%c0_39, %c0_40] : memref<4x512xf32, #tpu.memory_space<vmem>>, vector<4x512xf32>
    %cst_41 = arith.constant 0.000000e+00 : f32
    %96 = vector.broadcast %cst_41 : f32 to vector<4x512xf32>
    %97 = arith.maximumf %95, %96 : vector<4x512xf32>
    %c34_i32_42 = arith.constant 34 : i32
    %98 = tpu.dynamic_rotate %97 by %c34_i32_42 dim 1 : vector<4x512xf32>, i32 -> vector<4x512xf32>
    %c0_43 = arith.constant 0 : index
    %c0_44 = arith.constant 0 : index
    %99 = vector.load %arg2[%c0_43, %c0_44] : memref<13x512xf32, #tpu.memory_space<vmem>>, vector<1x512xf32>
    %100 = vector.shape_cast %99 : vector<1x512xf32> to vector<512xf32>
    %101 = vector.shape_cast %100 : vector<512xf32> to vector<1x512xf32>
    %102 = vector.broadcast %101 : vector<1x512xf32> to vector<4x512xf32>
    %103 = arith.mulf %98, %102 : vector<4x512xf32>
    %c0_45 = arith.constant 0 : index
    %c0_46 = arith.constant 0 : index
    %104 = vector.load %arg8[%c0_45, %c0_46] : memref<52x512xf32, #tpu.memory_space<vmem>>, vector<4x512xf32>
    tpu.vector_store %arg8[%c0_45, %c0_46], %103 {strides = array<i32>} : memref<52x512xf32, #tpu.memory_space<vmem>>, vector<4x512xf32>,
    %c33_i32_47 = arith.constant 33 : i32
    %105 = tpu.dynamic_rotate %97 by %c33_i32_47 dim 1 : vector<4x512xf32>, i32 -> vector<4x512xf32>
    %c1_48 = arith.constant 1 : index
    %c0_49 = arith.constant 0 : index
    %106 = vector.load %arg2[%c1_48, %c0_49] : memref<13x512xf32, #tpu.memory_space<vmem>>, vector<1x512xf32>
    %107 = vector.shape_cast %106 : vector<1x512xf32> to vector<512xf32>
    %108 = vector.shape_cast %107 : vector<512xf32> to vector<1x512xf32>
    %109 = vector.broadcast %108 : vector<1x512xf32> to vector<4x512xf32>
    %110 = arith.mulf %105, %109 : vector<4x512xf32>
    %c4_50 = arith.constant 4 : index
    %c0_51 = arith.constant 0 : index
    %111 = vector.load %arg8[%c4_50, %c0_51] : memref<52x512xf32, #tpu.memory_space<vmem>>, vector<4x512xf32>
    tpu.vector_store %arg8[%c4_50, %c0_51], %110 {strides = array<i32>} : memref<52x512xf32, #tpu.memory_space<vmem>>, vector<4x512xf32>,
    %c32_i32_52 = arith.constant 32 : i32
    %112 = tpu.dynamic_rotate %97 by %c32_i32_52 dim 1 : vector<4x512xf32>, i32 -> vector<4x512xf32>
    %c2_53 = arith.constant 2 : index
    %c0_54 = arith.constant 0 : index
    %113 = vector.load %arg2[%c2_53, %c0_54] : memref<13x512xf32, #tpu.memory_space<vmem>>, vector<1x512xf32>
    %114 = vector.shape_cast %113 : vector<1x512xf32> to vector<512xf32>
    %115 = vector.shape_cast %114 : vector<512xf32> to vector<1x512xf32>
    %116 = vector.broadcast %115 : vector<1x512xf32> to vector<4x512xf32>
    %117 = arith.mulf %112, %116 : vector<4x512xf32>
    %c8_55 = arith.constant 8 : index
    %c0_56 = arith.constant 0 : index
    %118 = vector.load %arg8[%c8_55, %c0_56] : memref<52x512xf32, #tpu.memory_space<vmem>>, vector<4x512xf32>
    tpu.vector_store %arg8[%c8_55, %c0_56], %117 {strides = array<i32>} : memref<52x512xf32, #tpu.memory_space<vmem>>, vector<4x512xf32>,
    %c31_i32_57 = arith.constant 31 : i32
    %119 = tpu.dynamic_rotate %97 by %c31_i32_57 dim 1 : vector<4x512xf32>, i32 -> vector<4x512xf32>
    %c3_58 = arith.constant 3 : index
    %c0_59 = arith.constant 0 : index
    %120 = vector.load %arg2[%c3_58, %c0_59] : memref<13x512xf32, #tpu.memory_space<vmem>>, vector<1x512xf32>
    %121 = vector.shape_cast %120 : vector<1x512xf32> to vector<512xf32>
    %122 = vector.shape_cast %121 : vector<512xf32> to vector<1x512xf32>
    %123 = vector.broadcast %122 : vector<1x512xf32> to vector<4x512xf32>
    %124 = arith.mulf %119, %123 : vector<4x512xf32>
    %c12_60 = arith.constant 12 : index
    %c0_61 = arith.constant 0 : index
    %125 = vector.load %arg8[%c12_60, %c0_61] : memref<52x512xf32, #tpu.memory_space<vmem>>, vector<4x512xf32>
    tpu.vector_store %arg8[%c12_60, %c0_61], %124 {strides = array<i32>} : memref<52x512xf32, #tpu.memory_space<vmem>>, vector<4x512xf32>,
    %c30_i32_62 = arith.constant 30 : i32
    %126 = tpu.dynamic_rotate %97 by %c30_i32_62 dim 1 : vector<4x512xf32>, i32 -> vector<4x512xf32>
    %c4_63 = arith.constant 4 : index
    %c0_64 = arith.constant 0 : index
    %127 = vector.load %arg2[%c4_63, %c0_64] : memref<13x512xf32, #tpu.memory_space<vmem>>, vector<1x512xf32>
    %128 = vector.shape_cast %127 : vector<1x512xf32> to vector<512xf32>
    %129 = vector.shape_cast %128 : vector<512xf32> to vector<1x512xf32>
    %130 = vector.broadcast %129 : vector<1x512xf32> to vector<4x512xf32>
    %131 = arith.mulf %126, %130 : vector<4x512xf32>
    %c16_65 = arith.constant 16 : index
    %c0_66 = arith.constant 0 : index
    %132 = vector.load %arg8[%c16_65, %c0_66] : memref<52x512xf32, #tpu.memory_space<vmem>>, vector<4x512xf32>
    tpu.vector_store %arg8[%c16_65, %c0_66], %131 {strides = array<i32>} : memref<52x512xf32, #tpu.memory_space<vmem>>, vector<4x512xf32>,
    %c18_i32_67 = arith.constant 18 : i32
    %133 = tpu.dynamic_rotate %97 by %c18_i32_67 dim 1 : vector<4x512xf32>, i32 -> vector<4x512xf32>
    %c5_68 = arith.constant 5 : index
    %c0_69 = arith.constant 0 : index
    %134 = vector.load %arg2[%c5_68, %c0_69] : memref<13x512xf32, #tpu.memory_space<vmem>>, vector<1x512xf32>
    %135 = vector.shape_cast %134 : vector<1x512xf32> to vector<512xf32>
    %136 = vector.shape_cast %135 : vector<512xf32> to vector<1x512xf32>
    %137 = vector.broadcast %136 : vector<1x512xf32> to vector<4x512xf32>
    %138 = arith.mulf %133, %137 : vector<4x512xf32>
    %c20_70 = arith.constant 20 : index
    %c0_71 = arith.constant 0 : index
    %139 = vector.load %arg8[%c20_70, %c0_71] : memref<52x512xf32, #tpu.memory_space<vmem>>, vector<4x512xf32>
    tpu.vector_store %arg8[%c20_70, %c0_71], %138 {strides = array<i32>} : memref<52x512xf32, #tpu.memory_space<vmem>>, vector<4x512xf32>,
    %c17_i32_72 = arith.constant 17 : i32
    %140 = tpu.dynamic_rotate %97 by %c17_i32_72 dim 1 : vector<4x512xf32>, i32 -> vector<4x512xf32>
    %c6_73 = arith.constant 6 : index
    %c0_74 = arith.constant 0 : index
    %141 = vector.load %arg2[%c6_73, %c0_74] : memref<13x512xf32, #tpu.memory_space<vmem>>, vector<1x512xf32>
    %142 = vector.shape_cast %141 : vector<1x512xf32> to vector<512xf32>
    %143 = vector.shape_cast %142 : vector<512xf32> to vector<1x512xf32>
    %144 = vector.broadcast %143 : vector<1x512xf32> to vector<4x512xf32>
    %145 = arith.mulf %140, %144 : vector<4x512xf32>
    %c24_75 = arith.constant 24 : index
    %c0_76 = arith.constant 0 : index
    %146 = vector.load %arg8[%c24_75, %c0_76] : memref<52x512xf32, #tpu.memory_space<vmem>>, vector<4x512xf32>
    tpu.vector_store %arg8[%c24_75, %c0_76], %145 {strides = array<i32>} : memref<52x512xf32, #tpu.memory_space<vmem>>, vector<4x512xf32>,
    %c16_i32_77 = arith.constant 16 : i32
    %147 = tpu.dynamic_rotate %97 by %c16_i32_77 dim 1 : vector<4x512xf32>, i32 -> vector<4x512xf32>
    %c7_78 = arith.constant 7 : index
    %c0_79 = arith.constant 0 : index
    %148 = vector.load %arg2[%c7_78, %c0_79] : memref<13x512xf32, #tpu.memory_space<vmem>>, vector<1x512xf32>
    %149 = vector.shape_cast %148 : vector<1x512xf32> to vector<512xf32>
    %150 = vector.shape_cast %149 : vector<512xf32> to vector<1x512xf32>
    %151 = vector.broadcast %150 : vector<1x512xf32> to vector<4x512xf32>
    %152 = arith.mulf %147, %151 : vector<4x512xf32>
    %c28_80 = arith.constant 28 : index
    %c0_81 = arith.constant 0 : index
    %153 = vector.load %arg8[%c28_80, %c0_81] : memref<52x512xf32, #tpu.memory_space<vmem>>, vector<4x512xf32>
    tpu.vector_store %arg8[%c28_80, %c0_81], %152 {strides = array<i32>} : memref<52x512xf32, #tpu.memory_space<vmem>>, vector<4x512xf32>,
    %c15_i32_82 = arith.constant 15 : i32
    %154 = tpu.dynamic_rotate %97 by %c15_i32_82 dim 1 : vector<4x512xf32>, i32 -> vector<4x512xf32>
    %c8_83 = arith.constant 8 : index
    %c0_84 = arith.constant 0 : index
    %155 = vector.load %arg2[%c8_83, %c0_84] : memref<13x512xf32, #tpu.memory_space<vmem>>, vector<1x512xf32>
    %156 = vector.shape_cast %155 : vector<1x512xf32> to vector<512xf32>
    %157 = vector.shape_cast %156 : vector<512xf32> to vector<1x512xf32>
    %158 = vector.broadcast %157 : vector<1x512xf32> to vector<4x512xf32>
    %159 = arith.mulf %154, %158 : vector<4x512xf32>
    %c32_85 = arith.constant 32 : index
    %c0_86 = arith.constant 0 : index
    %160 = vector.load %arg8[%c32_85, %c0_86] : memref<52x512xf32, #tpu.memory_space<vmem>>, vector<4x512xf32>
    tpu.vector_store %arg8[%c32_85, %c0_86], %159 {strides = array<i32>} : memref<52x512xf32, #tpu.memory_space<vmem>>, vector<4x512xf32>,
    %c14_i32_87 = arith.constant 14 : i32
    %161 = tpu.dynamic_rotate %97 by %c14_i32_87 dim 1 : vector<4x512xf32>, i32 -> vector<4x512xf32>
    %c9_88 = arith.constant 9 : index
    %c0_89 = arith.constant 0 : index
    %162 = vector.load %arg2[%c9_88, %c0_89] : memref<13x512xf32, #tpu.memory_space<vmem>>, vector<1x512xf32>
    %163 = vector.shape_cast %162 : vector<1x512xf32> to vector<512xf32>
    %164 = vector.shape_cast %163 : vector<512xf32> to vector<1x512xf32>
    %165 = vector.broadcast %164 : vector<1x512xf32> to vector<4x512xf32>
    %166 = arith.mulf %161, %165 : vector<4x512xf32>
    %c36_90 = arith.constant 36 : index
    %c0_91 = arith.constant 0 : index
    %167 = vector.load %arg8[%c36_90, %c0_91] : memref<52x512xf32, #tpu.memory_space<vmem>>, vector<4x512xf32>
    tpu.vector_store %arg8[%c36_90, %c0_91], %166 {strides = array<i32>} : memref<52x512xf32, #tpu.memory_space<vmem>>, vector<4x512xf32>,
    %c2_i32_92 = arith.constant 2 : i32
    %168 = tpu.dynamic_rotate %97 by %c2_i32_92 dim 1 : vector<4x512xf32>, i32 -> vector<4x512xf32>
    %c10_93 = arith.constant 10 : index
    %c0_94 = arith.constant 0 : index
    %169 = vector.load %arg2[%c10_93, %c0_94] : memref<13x512xf32, #tpu.memory_space<vmem>>, vector<1x512xf32>
    %170 = vector.shape_cast %169 : vector<1x512xf32> to vector<512xf32>
    %171 = vector.shape_cast %170 : vector<512xf32> to vector<1x512xf32>
    %172 = vector.broadcast %171 : vector<1x512xf32> to vector<4x512xf32>
    %173 = arith.mulf %168, %172 : vector<4x512xf32>
    %c40_95 = arith.constant 40 : index
    %c0_96 = arith.constant 0 : index
    %174 = vector.load %arg8[%c40_95, %c0_96] : memref<52x512xf32, #tpu.memory_space<vmem>>, vector<4x512xf32>
    tpu.vector_store %arg8[%c40_95, %c0_96], %173 {strides = array<i32>} : memref<52x512xf32, #tpu.memory_space<vmem>>, vector<4x512xf32>,
    %c1_i32_97 = arith.constant 1 : i32
    %175 = tpu.dynamic_rotate %97 by %c1_i32_97 dim 1 : vector<4x512xf32>, i32 -> vector<4x512xf32>
    %c11_98 = arith.constant 11 : index
    %c0_99 = arith.constant 0 : index
    %176 = vector.load %arg2[%c11_98, %c0_99] : memref<13x512xf32, #tpu.memory_space<vmem>>, vector<1x512xf32>
    %177 = vector.shape_cast %176 : vector<1x512xf32> to vector<512xf32>
    %178 = vector.shape_cast %177 : vector<512xf32> to vector<1x512xf32>
    %179 = vector.broadcast %178 : vector<1x512xf32> to vector<4x512xf32>
    %180 = arith.mulf %175, %179 : vector<4x512xf32>
    %c44_100 = arith.constant 44 : index
    %c0_101 = arith.constant 0 : index
    %181 = vector.load %arg8[%c44_100, %c0_101] : memref<52x512xf32, #tpu.memory_space<vmem>>, vector<4x512xf32>
    tpu.vector_store %arg8[%c44_100, %c0_101], %180 {strides = array<i32>} : memref<52x512xf32, #tpu.memory_space<vmem>>, vector<4x512xf32>,
    %c48_102 = arith.constant 48 : index
    %c0_103 = arith.constant 0 : index
    %182 = vector.load %arg8[%c48_102, %c0_103] : memref<52x512xf32, #tpu.memory_space<vmem>>, vector<4x512xf32>
    tpu.vector_store %arg8[%c48_102, %c0_103], %97 {strides = array<i32>} : memref<52x512xf32, #tpu.memory_space<vmem>>, vector<4x512xf32>,
    %c0_104 = arith.constant 0 : index
    %c0_105 = arith.constant 0 : index
    %183 = vector.load %arg5[%c0_104, %c0_105] : memref<4x52xf32, #tpu.memory_space<vmem>>, vector<4x52xf32>
    %c0_106 = arith.constant 0 : index
    %c0_107 = arith.constant 0 : index
    %184 = vector.load %arg8[%c0_106, %c0_107] : memref<52x512xf32, #tpu.memory_space<vmem>>, vector<52x512xf32>
    %cst_108 = arith.constant dense<0.000000e+00> : vector<4x512xf32>
    %185 = tpu.matmul %183, %184, %cst_108 {dimension_numbers = #tpu.dot_dimension_numbers<[1], [0], [0], [1], [0, 0, 1, 1], [], []>} : vector<4x52xf32>, vector<52x512xf32>, vector<4x512xf32> -> vector<4x512xf32>
    %c0_109 = arith.constant 0 : index
    %c0_110 = arith.constant 0 : index
    %186 = vector.load %arg6[%c0_109, %c0_110] : memref<4x1xf32, #tpu.memory_space<vmem>>, vector<4x1xf32>
    %187 = vector.broadcast %186 : vector<4x1xf32> to vector<4x512xf32>
    %188 = arith.addf %185, %187 : vector<4x512xf32>
    %c0_111 = arith.constant 0 : index
    %c0_112 = arith.constant 0 : index
    %189 = vector.load %arg9[%c0_111, %c0_112] : memref<4x512xf32, #tpu.memory_space<vmem>>, vector<4x512xf32>
    tpu.vector_store %arg9[%c0_111, %c0_112], %188 {strides = array<i32>} : memref<4x512xf32, #tpu.memory_space<vmem>>, vector<4x512xf32>,
    %c0_113 = arith.constant 0 : index
    %c0_114 = arith.constant 0 : index
    %190 = vector.load %arg1[%c0_113, %c0_114] : memref<4x512xf32, #tpu.memory_space<vmem>>, vector<4x512xf32>
    %c0_115 = arith.constant 0 : index
    %c0_116 = arith.constant 0 : index
    %191 = vector.load %arg9[%c0_115, %c0_116] : memref<4x512xf32, #tpu.memory_space<vmem>>, vector<4x512xf32>
    %192 = arith.addf %190, %191 : vector<4x512xf32>
    %c0_117 = arith.constant 0 : index
    %c0_118 = arith.constant 0 : index
    %193 = vector.load %arg7[%c0_117, %c0_118] : memref<4x512xf32, #tpu.memory_space<vmem>>, vector<4x512xf32>
    tpu.vector_store %arg7[%c0_117, %c0_118], %192 {strides = array<i32>} : memref<4x512xf32, #tpu.memory_space<vmem>>, vector<4x512xf32>,
    return
  }
  func.func @transform_0(%arg0: i32) -> (i32, i32) {
    %c0_i32 = arith.constant 0 : i32
    %c0_i32_0 = arith.constant 0 : i32
    return %c0_i32, %arg0 : i32, i32
  }
  func.func @transform_1(%arg0: i32) -> (i32, i32) {
    %c0_i32 = arith.constant 0 : i32
    %c0_i32_0 = arith.constant 0 : i32
    %c0_i32_1 = arith.constant 0 : i32
    return %c0_i32, %c0_i32_0 : i32, i32
  }
  func.func @transform_2(%arg0: i32) -> (i32, i32) {
    %c0_i32 = arith.constant 0 : i32
    %c0_i32_0 = arith.constant 0 : i32
    %c0_i32_1 = arith.constant 0 : i32
    return %c0_i32, %c0_i32_0 : i32, i32
  }
  func.func @transform_3(%arg0: i32) -> (i32, i32) {
    %c0_i32 = arith.constant 0 : i32
    %c0_i32_0 = arith.constant 0 : i32
    %c0_i32_1 = arith.constant 0 : i32
    return %c0_i32, %c0_i32_0 : i32, i32
  }
  func.func @transform_4(%arg0: i32) -> (i32, i32) {
    %c0_i32 = arith.constant 0 : i32
    %c0_i32_0 = arith.constant 0 : i32
    %c0_i32_1 = arith.constant 0 : i32
    return %c0_i32, %c0_i32_0 : i32, i32
  }
  func.func @transform_5(%arg0: i32) -> (i32, i32) {
    %c0_i32 = arith.constant 0 : i32
    %c0_i32_0 = arith.constant 0 : i32
    %c0_i32_1 = arith.constant 0 : i32
    return %c0_i32, %c0_i32_0 : i32, i32
  }
  func.func @transform_6(%arg0: i32) -> (i32, i32) {
    %c0_i32 = arith.constant 0 : i32
    %c0_i32_0 = arith.constant 0 : i32
    return %c0_i32, %arg0 : i32, i32
  }
}

</mosaic_0001>

<bundles_post_ra>
// kernel: causal_resblock.1
= control target key start
LH: loop header
LB: loop body
LE: loop exit
PB: predicated region body
PF: predicated region fallthrough
CT: control target
= control target key end

     0   :  { %s1569_s25 = smov 34   ;;  %s1570_s26 = smov 33   ;;  %v48_v54 = vlaneseq  ;;  %vm672_vm11 = vcmask 1043456   ;;  %vm668_vm13 = vcmask 424960   ;;  %s2423_s0 = inlined_call_operand.vmem [shape: f32[4,512], index: 0, kind: input, shape index: {}]   ;;  %s2424_s1 = inlined_call_operand.vmem [shape: f32[13,512], index: 1, kind: input, shape index: {}]   ;;  %s2425_s3 = inlined_call_operand.vmem [shape: f32[4,1], index: 3, kind: input, shape index: {}]   ;;  %s2426_s2 = inlined_call_operand.vmem [shape: f32[4,52], index: 2, kind: input, shape index: {}]   ;;  %s2427_s5 = inlined_call_operand.vmem [shape: f32[4,1], index: 5, kind: input, shape index: {}]   ;;  %s2428_s4 = inlined_call_operand.vmem [shape: f32[4,52], index: 4, kind: input, shape index: {}]   ;;  %s2429_s6 = inlined_call_operand.vmem [shape: f32[4,512], index: 6, kind: output, shape index: {}]  }
   0x1   :  { %v24_v0 = vld [vmem:[%s2423_s0 + $0x8] sm:$0xff]  ;;  %v23_v1 = vld [vmem:[%s2423_s0] sm:$0xff]  ;;  %s1571_s27 = smov 32   ;;  %s1572_s28 = smov 31  }
   0x2   :  { %v1623_v2 = vmax.f32 %v24_v0, 0.0  ;;  %v1625_v3 = vmax.f32 %v23_v1, 0.0  ;;  %s1573_s29 = smov 30   ;;  %s1574_s30 = smov 18   ;;  %v1719_v57 = vand.u32 127, %v48_v54 }
   0x3   :  { %s1575_s7 = smov 17   ;;  %s1576_s8 = smov 16   ;;  %v1715_v55 = vld [vmem:[%s2424_s1] ss:$8 sm:$0xf] }
   0x4   :  { %31 = vst [vmem:[#allocation1 + $0x10] ss:$2 sm:$0xff] %v1623_v2  ;;  %s1577_s9 = smov 15   ;;  %s1578_s10 = smov 14   ;;  %vm50_vm0 = vcmp.lt.s32.totalorder %v1719_v57, 34  ;;  %v60_v58 = vperm.slane %v1715_v55, 3 }
   0x5   :  { %29 = vst [vmem:[#allocation1] ss:$2 sm:$0xff] %v1625_v3  ;;  %s1579_s11 = smov 2   ;;  %s1580_s12 = smov 1   ;;  %vm92_vm1 = vcmp.lt.s32.totalorder %v1719_v57, 33  ;;  %vm147_vm2 = vcmp.lt.s32.totalorder %v1719_v57, 32 }
   0x6   :  { %v1737_v62 = vld [vmem:[%s2424_s1 + $0x1] ss:$8 sm:$0xf]  ;;  %vm190_vm3 = vcmp.lt.s32.totalorder %v1719_v57, 31  ;;  %vm245_vm4 = vcmp.lt.s32.totalorder %v1719_v57, 30  ;;  %vm288_vm5 = vcmp.lt.s32.totalorder %v1719_v57, 18 }
   0x7   :  { %v103_v0 = vperm.slane %v1737_v62, 3  ;;  %vm343_vm6 = vcmp.lt.s32.totalorder %v1719_v57, 17  ;;  %vm484_vm7 = vcmp.lt.s32.totalorder %v1719_v57, 14  ;;  %vm386_vm8 = vcmp.lt.s32.totalorder %v1719_v57, 16 }
   0x8   :  { %vm441_vm9 = vcmp.lt.s32.totalorder %v1719_v57, 15  ;;  %vm539_vm10 = vcmp.lt.s32.totalorder %v1719_v57, 2  ;;  %vm582_vm12 = vcmp.lt.s32.totalorder %v1719_v57, 1 }
   0xb   :  { %v35_v4 = vld.sshfl [vmem:[#allocation1 + $0x18] sm:$0xff pattern:$0x75316420]  ;;  %v34_v5 = vld.sshfl [vmem:[#allocation1 + $0x10] sm:$0xff pattern:$0x75316420] }
   0xc   :  { %46 = vrot.lane.b32.xlu2 %v35_v4, %s1569_s25  ;;  %44 = vrot.lane.b32.xlu1 %v34_v5, %s1569_s25  ;;  %75 = vst [vmem:[#allocation1 + $0x10] ss:$2 sm:$0xff] %v1623_v2  ;;  %v1632_v6 = vld.sshfl [vmem:[#allocation1] sm:$0xff pattern:$0x75316420] }
   0xd   :  { %v1634_v7 = vld.sshfl [vmem:[#allocation1 + $0x8] sm:$0xff pattern:$0x75316420] }
   0xe   :  { %73 = vst [vmem:[#allocation1] ss:$2 sm:$0xff] %v1625_v3  ;;  %v1756_v4 = vld [vmem:[%s2424_s1 + $0x2] ss:$8 sm:$0xf] }
  0x13   :  { %v79_v8 = vld.sshfl [vmem:[#allocation1 + $0x18] sm:$0xff pattern:$0x75316420]  ;;  %v78_v9 = vld.sshfl [vmem:[#allocation1 + $0x10] sm:$0xff pattern:$0x75316420] }
  0x14   :  { %90 = vrot.lane.b32.xlu0 %v79_v8, %s1570_s26  ;;  %88 = vrot.lane.b32.xlu2 %v78_v9, %s1570_s26  ;;  %130 = vst [vmem:[#allocation1 + $0x10] ss:$2 sm:$0xff] %v1623_v2  ;;  %v102_v8 = vperm.slane %v1737_v62, 2 }
  0x15   :  { %v77_v10 = vld.sshfl [vmem:[#allocation1 + $0x8] sm:$0xff pattern:$0x75316420]  ;;  %v1640_v11 = vld.sshfl [vmem:[#allocation1] sm:$0xff pattern:$0x75316420] }
  0x16   :  { %128 = vst [vmem:[#allocation1] ss:$2 sm:$0xff] %v1625_v3 }
  0x1b   :  { %v133_v12 = vld.sshfl [vmem:[#allocation1 + $0x10] sm:$0xff pattern:$0x75316420]  ;;  %v134_v13 = vld.sshfl [vmem:[#allocation1 + $0x18] sm:$0xff pattern:$0x75316420] }
  0x1c   :  { %143 = vrot.lane.b32.xlu1 %v133_v12, %s1571_s27  ;;  %145 = vrot.lane.b32.xlu2 %v134_v13, %s1571_s27  ;;  %173 = vst [vmem:[#allocation1 + $0x10] ss:$2 sm:$0xff] %v1623_v2 }
  0x1d   :  { %86 = vrot.lane.b32.xlu0 %v77_v10, %s1570_s26  ;;  %v1647_v14 = vld.sshfl [vmem:[#allocation1] sm:$0xff pattern:$0x75316420]  ;;  %v1649_v15 = vld.sshfl [vmem:[#allocation1 + $0x8] sm:$0xff pattern:$0x75316420] }
  0x1e   :  { %171 = vst [vmem:[#allocation1] ss:$2 sm:$0xff] %v1625_v3 }
  0x23   :  { %v176_v16 = vld.sshfl [vmem:[#allocation1 + $0x10] sm:$0xff pattern:$0x75316420]  ;;  %v177_v17 = vld.sshfl [vmem:[#allocation1 + $0x18] sm:$0xff pattern:$0x75316420] }
  0x24   :  { %186 = vrot.lane.b32.xlu1 %v176_v16, %s1572_s28  ;;  %188 = vrot.lane.b32.xlu2 %v177_v17, %s1572_s28  ;;  %228 = vst [vmem:[#allocation1 + $0x10] ss:$2 sm:$0xff] %v1623_v2 }
  0x25   :  { %v175_v18 = vld.sshfl [vmem:[#allocation1 + $0x8] sm:$0xff pattern:$0x75316420]  ;;  %v1655_v19 = vld.sshfl [vmem:[#allocation1] sm:$0xff pattern:$0x75316420] }
  0x26   :  { %184 = vrot.lane.b32.xlu0 %v175_v18, %s1572_s28  ;;  %226 = vst [vmem:[#allocation1] ss:$2 sm:$0xff] %v1625_v3 }
  0x2b   :  { %v232_v20 = vld.sshfl [vmem:[#allocation1 + $0x18] sm:$0xff pattern:$0x75316420]  ;;  %v231_v21 = vld.sshfl [vmem:[#allocation1 + $0x10] sm:$0xff pattern:$0x75316420] }
  0x2c   :  { %243 = vrot.lane.b32.xlu1 %v232_v20, %s1573_s29  ;;  %271 = vst [vmem:[#allocation1 + $0x10] ss:$2 sm:$0xff] %v1623_v2 }
  0x2d   :  { %v230_v22 = vld.sshfl [vmem:[#allocation1 + $0x8] sm:$0xff pattern:$0x75316420]  ;;  %v1661_v23 = vld.sshfl [vmem:[#allocation1] sm:$0xff pattern:$0x75316420] }
  0x2e   :  { %241 = vrot.lane.b32.xlu0 %v231_v21, %s1573_s29  ;;  %269 = vst [vmem:[#allocation1] ss:$2 sm:$0xff] %v1625_v3 }
  0x33   :  { %v275_v24 = vld.sshfl [vmem:[#allocation1 + $0x18] sm:$0xff pattern:$0x75316420]  ;;  %v274_v25 = vld.sshfl [vmem:[#allocation1 + $0x10] sm:$0xff pattern:$0x75316420] }
  0x34   :  { %286 = vrot.lane.b32.xlu2 %v275_v24, %s1574_s30  ;;  %326 = vst [vmem:[#allocation1 + $0x10] ss:$2 sm:$0xff] %v1623_v2  ;;  %239 = vrot.lane.b32.xlu1 %v230_v22, %s1573_s29 }
  0x35   :  { %v273_v26 = vld.sshfl [vmem:[#allocation1 + $0x8] sm:$0xff pattern:$0x75316420]  ;;  %v1668_v27 = vld.sshfl [vmem:[#allocation1] sm:$0xff pattern:$0x75316420] }
  0x36   :  { %324 = vst [vmem:[#allocation1] ss:$2 sm:$0xff] %v1625_v3 }
  0x3b   :  { %v329_v28 = vld.sshfl [vmem:[#allocation1 + $0x10] sm:$0xff pattern:$0x75316420]  ;;  %v330_v29 = vld.sshfl [vmem:[#allocation1 + $0x18] sm:$0xff pattern:$0x75316420] }
  0x3c   :  { %339 = vrot.lane.b32.xlu0 %v329_v28, %s1575_s7  ;;  %284 = vrot.lane.b32.xlu1 %v274_v25, %s1574_s30  ;;  %369 = vst [vmem:[#allocation1 + $0x10] ss:$2 sm:$0xff] %v1623_v2 }
  0x3d   :  { %282 = vrot.lane.b32.xlu2 %v273_v26, %s1574_s30  ;;  %v328_v30 = vld.sshfl [vmem:[#allocation1 + $0x8] sm:$0xff pattern:$0x75316420]  ;;  %v1675_v31 = vld.sshfl [vmem:[#allocation1] sm:$0xff pattern:$0x75316420] }
  0x3e   :  { %367 = vst [vmem:[#allocation1] ss:$2 sm:$0xff] %v1625_v3 }
  0x43   :  { %v373_v32 = vld.sshfl [vmem:[#allocation1 + $0x18] sm:$0xff pattern:$0x75316420]  ;;  %v372_v33 = vld.sshfl [vmem:[#allocation1 + $0x10] sm:$0xff pattern:$0x75316420] }
  0x44   :  { %341 = vrot.lane.b32.xlu1 %v330_v29, %s1575_s7  ;;  %337 = vrot.lane.b32.xlu0 %v328_v30, %s1575_s7  ;;  %424 = vst [vmem:[#allocation1 + $0x10] ss:$2 sm:$0xff] %v1623_v2 }
  0x45   :  { %384 = vrot.lane.b32.xlu2 %v373_v32, %s1576_s8  ;;  %v371_v34 = vld.sshfl [vmem:[#allocation1 + $0x8] sm:$0xff pattern:$0x75316420]  ;;  %v370_v35 = vld.sshfl [vmem:[#allocation1] sm:$0xff pattern:$0x75316420] }
  0x46   :  { %422 = vst [vmem:[#allocation1] ss:$2 sm:$0xff] %v1625_v3 }
  0x4b   :  { %v427_v36 = vld.sshfl [vmem:[#allocation1 + $0x10] sm:$0xff pattern:$0x75316420]  ;;  %v428_v37 = vld.sshfl [vmem:[#allocation1 + $0x18] sm:$0xff pattern:$0x75316420] }
  0x4c   :  { %382 = vrot.lane.b32.xlu1 %v372_v33, %s1576_s8  ;;  %437 = vrot.lane.b32.xlu0 %v427_v36, %s1577_s9  ;;  %467 = vst [vmem:[#allocation1 + $0x10] ss:$2 sm:$0xff] %v1623_v2 }
  0x4d   :  { %380 = vrot.lane.b32.xlu2 %v371_v34, %s1576_s8  ;;  %v426_v38 = vld.sshfl [vmem:[#allocation1 + $0x8] sm:$0xff pattern:$0x75316420]  ;;  %v425_v39 = vld.sshfl [vmem:[#allocation1] sm:$0xff pattern:$0x75316420] }
  0x4e   :  { %465 = vst [vmem:[#allocation1] ss:$2 sm:$0xff] %v1625_v3 }
  0x53   :  { %v470_v40 = vld.sshfl [vmem:[#allocation1 + $0x10] sm:$0xff pattern:$0x75316420]  ;;  %v471_v41 = vld.sshfl [vmem:[#allocation1 + $0x18] sm:$0xff pattern:$0x75316420] }
  0x54   :  { %439 = vrot.lane.b32.xlu1 %v428_v37, %s1577_s9  ;;  %435 = vrot.lane.b32.xlu0 %v426_v38, %s1577_s9  ;;  %522 = vst [vmem:[#allocation1 + $0x10] ss:$2 sm:$0xff] %v1623_v2 }
  0x55   :  { %v469_v42 = vld.sshfl [vmem:[#allocation1 + $0x8] sm:$0xff pattern:$0x75316420]  ;;  %v468_v43 = vld.sshfl [vmem:[#allocation1] sm:$0xff pattern:$0x75316420] }
  0x56   :  { %478 = vrot.lane.b32.xlu2 %v469_v42, %s1578_s10  ;;  %520 = vst [vmem:[#allocation1] ss:$2 sm:$0xff] %v1625_v3 }
  0x5b   :  { %v525_v44 = vld.sshfl [vmem:[#allocation1 + $0x10] sm:$0xff pattern:$0x75316420]  ;;  %v526_v45 = vld.sshfl [vmem:[#allocation1 + $0x18] sm:$0xff pattern:$0x75316420] }
  0x5c   :  { %480 = vrot.lane.b32.xlu1 %v470_v40, %s1578_s10  ;;  %565 = vst [vmem:[#allocation1 + $0x10] ss:$2 sm:$0xff] %v1623_v2  ;;  %v1825_v40 = vld [vmem:[%s2424_s1 + $0x5] ss:$8 sm:$0xf] }
  0x5d   :  { %v524_v46 = vld.sshfl [vmem:[#allocation1 + $0x8] sm:$0xff pattern:$0x75316420]  ;;  %v523_v47 = vld.sshfl [vmem:[#allocation1] sm:$0xff pattern:$0x75316420] }
  0x5e   :  { %476 = vrot.lane.b32.xlu2 %v468_v43, %s1578_s10  ;;  %533 = vrot.lane.b32.xlu0 %v524_v46, %s1579_s11  ;;  %563 = vst [vmem:[#allocation1] ss:$2 sm:$0xff] %v1625_v3  ;;  %v299_v42 = vperm.slane %v1825_v40, 3 }
  0x63   :  { %v568_v48 = vld.sshfl [vmem:[#allocation1 + $0x10] sm:$0xff pattern:$0x75316420]  ;;  %v569_v49 = vld.sshfl [vmem:[#allocation1 + $0x18] sm:$0xff pattern:$0x75316420] }
  0x64   :  { %482 = vrot.lane.b32.xlu1 %v471_v41, %s1578_s10  ;;  %620 = vst [vmem:[#allocation1 + $0x10] ss:$2 sm:$0xff] %v1623_v2  ;;  %v298_v41 = vperm.slane %v1825_v40, 2 }
  0x65   :  { %v566_v50 = vld.sshfl [vmem:[#allocation1] sm:$0xff pattern:$0x75316420]  ;;  %v567_v51 = vld.sshfl [vmem:[#allocation1 + $0x8] sm:$0xff pattern:$0x75316420] }
  0x66   :  { %535 = vrot.lane.b32.xlu2 %v525_v44, %s1579_s11  ;;  %531 = vrot.lane.b32.xlu0 %v523_v47, %s1579_s11  ;;  %v1702_v52 = vpop.permute.xlu2 %46  ;;  %618 = vst [vmem:[#allocation1] ss:$2 sm:$0xff] %v1625_v3 }
  0x6c   :  { %141 = vrot.lane.b32.xlu1 %v1649_v15, %s1571_s27 }
  0x6e   :  { %537 = vrot.lane.b32.xlu2 %v526_v45, %s1579_s11  ;;  %578 = vrot.lane.b32.xlu0 %v568_v48, %s1580_s12  ;;  %v89_v53 = vpop.permute.xlu2 %88 }
  0x74   :  { %574 = vrot.lane.b32.xlu1 %v566_v50, %s1580_s12  ;;  %v1841_v50 = vld [vmem:[%s2424_s1 + $0x6] ss:$8 sm:$0xf] }
  0x75   :  { %v354_v54 = vperm.slane %v1841_v50, 3 }
  0x76   :  { %378 = vrot.lane.b32.xlu2 %v370_v35, %s1576_s8  ;;  %580 = vrot.lane.b32.xlu0 %v569_v49, %s1580_s12  ;;  %v1717_v56 = vpop.permute.xlu2 %145 }
  0x7c   :  { %42 = vrot.lane.b32.xlu1 %v1634_v7, %s1569_s25  ;;  %v158_v7 = vperm.slane %v1756_v4, 3 }
  0x7e   :  { %280 = vrot.lane.b32.xlu2 %v1668_v27, %s1574_s30  ;;  %576 = vrot.lane.b32.xlu0 %v567_v51, %s1580_s12  ;;  %v1728_v59 = vpop.permute.xlu1 %44  ;;  %v1741_v63 = vpop.permute.xlu2 %188 }
  0x7f   :  { %v51_v60 = vsel %vm50_vm0, %v1728_v59, %v1702_v52 }
  0x80   :  { %v68_v61 = vmul.f32 %v60_v58, %v51_v60  ;;  %v353_v58 = vperm.slane %v1841_v50, 2  ;;  %v1849_v60 = vld [vmem:[%s2424_s1 + $0x21] ss:$8 sm:$0xf] }
  0x82   :  { %72 = vst [vmem:[#allocation2 + $0x18] sm:$0xf] %v68_v61 }
  0x84   :  { %182 = vrot.lane.b32.xlu1 %v1655_v19, %s1572_s28 }
  0x86   :  { %237 = vrot.lane.b32.xlu2 %v1661_v23, %s1573_s29  ;;  %433 = vrot.lane.b32.xlu0 %v425_v39, %s1577_s9  ;;  %v1748_v1 = vpop.permute.xlu0 %90 }
  0x87   :  { %v93_v2 = vsel %vm92_vm1, %v89_v53, %v1748_v1 }
  0x88   :  { %v111_v3 = vmul.f32 %v103_v0, %v93_v2  ;;  %v493_v2 = vperm.slane %v1849_v60, 1 }
  0x8a   :  { %v119_v5 = vrot.slane %v111_v3, 4 }
  0x8c   :  { %127 = vst [vmem:[#allocation2 + $0x18] sm:$0xf0] %v119_v5  ;;  %139 = vrot.lane.b32.xlu1 %v1647_v14, %s1571_s27 }
  0x8e   :  { %40 = vrot.lane.b32.xlu2 %v1632_v6, %s1569_s25  ;;  %335 = vrot.lane.b32.xlu0 %v1675_v31, %s1575_s7  ;;  %v1767_v9 = vpop.permute.xlu1 %143  ;;  %v1769_v10 = vpop.permute.xlu2 %286  ;;  %v1783_v6 = vld [vmem:[%s2424_s1 + $0x3] ss:$8 sm:$0xf] }
  0x8f   :  { %v148_v12 = vsel %vm147_vm2, %v1767_v9, %v1717_v56  ;;  %v1775_v13 = vpop.permute.xlu0 %86  ;;  %v201_v18 = vperm.slane %v1783_v6, 3  ;;  %v200_v20 = vperm.slane %v1783_v6, 2 }
  0x90   :  { %v166_v14 = vmul.f32 %v158_v7, %v148_v12  ;;  %v94_v15 = vsel %vm92_vm1, %v1775_v13, %v89_v53 }
  0x91   :  { %v110_v16 = vmul.f32 %v102_v8, %v94_v15  ;;  %v1522_v15 = vld [vmem:[%s2424_s1 + $0x7] ss:$8 sm:$0xf] }
  0x92   :  { %170 = vst [vmem:[#allocation2 + $0x48] sm:$0xf] %v166_v14 }
  0x93   :  { %v118_v17 = vrot.slane %v110_v16, 4 }
  0x95   :  { %126 = vst [vmem:[#allocation2 + $0xd8] sm:$0xf0] %v118_v17 }
  0x96   :  { %84 = vrot.lane.b32.xlu0 %v1640_v11, %s1570_s26  ;;  %v187_v19 = vpop.permute.xlu1 %186  ;;  %v1803_v11 = vld [vmem:[%s2424_s1 + $0x4] ss:$8 sm:$0xf] }
  0x97   :  { %v191_v21 = vsel %vm190_vm3, %v187_v19, %v1741_v63  ;;  %v1793_v22 = vpop.permute.xlu2 %282  ;;  %v256_v30 = vperm.slane %v1803_v11, 3  ;;  %v255_v35 = vperm.slane %v1803_v11, 2 }
  0x98   :  { %v209_v23 = vmul.f32 %v201_v18, %v191_v21  ;;  %v1795_v24 = vpop.permute.xlu0 %184  ;;  %v396_v18 = vperm.slane %v1522_v15, 2 }
  0x99   :  { %v192_v25 = vsel %vm190_vm3, %v1795_v24, %v187_v19  ;;  %v397_v19 = vperm.slane %v1522_v15, 3 }
  0x9a   :  { %v217_v26 = vrot.slane %v209_v23, 4  ;;  %v208_v27 = vmul.f32 %v200_v20, %v192_v25 }
  0x9c   :  { %225 = vst [vmem:[#allocation2 + $0x48] sm:$0xf0] %v217_v26  ;;  %v216_v28 = vrot.slane %v208_v27, 4 }
  0x9e   :  { %v1805_v29 = vpop.permute.xlu1 %243  ;;  %224 = vst [vmem:[#allocation2 + $0x30] sm:$0xf0] %v216_v28 }
  0x9f   :  { %v1809_v31 = vpop.permute.xlu2 %384 }
  0xa0   :  { %v242_v32 = vpop.permute.xlu0 %241 }
  0xa1   :  { %v246_v33 = vsel %vm245_vm4, %v242_v32, %v1805_v29 }
  0xa2   :  { %v264_v34 = vmul.f32 %v256_v30, %v246_v33  ;;  %v1882_v30 = vld [vmem:[%s2424_s1 + $0x20] ss:$8 sm:$0xf] }
  0xa4   :  { %268 = vst [vmem:[#allocation2 + $0x58] sm:$0xf] %v264_v34  ;;  %v452_v34 = vperm.slane %v1882_v30, 3 }
  0xa6   :  { %v1815_v36 = vpop.permute.xlu1 %239 }
  0xa7   :  { %v247_v37 = vsel %vm245_vm4, %v1815_v36, %v242_v32  ;;  %v1820_v38 = vpop.permute.xlu2 %380 }
  0xa8   :  { %v263_v39 = vmul.f32 %v255_v35, %v247_v37  ;;  %v451_v35 = vperm.slane %v1882_v30, 2  ;;  %v1890_v37 = vld [vmem:[%s2424_s1 + $0x22] ss:$8 sm:$0xf] }
  0xaa   :  { %267 = vst [vmem:[#allocation2 + $0x8] sm:$0xf] %v263_v39 }
  0xae   :  { %v340_v43 = vpop.permute.xlu0 %339  ;;  %v285_v44 = vpop.permute.xlu1 %284 }
  0xaf   :  { %v289_v45 = vsel %vm288_vm5, %v285_v44, %v1769_v10  ;;  %v290_v46 = vsel %vm288_vm5, %v1793_v22, %v285_v44 }
  0xb0   :  { %v306_v47 = vmul.f32 %v298_v41, %v290_v46  ;;  %v307_v48 = vmul.f32 %v299_v42, %v289_v45  ;;  %v1836_v49 = vpop.permute.xlu2 %478  ;;  %v550_v42 = vperm.slane %v1890_v37, 3 }
  0xb2   :  { %v314_v51 = vrot.slane %v306_v47, 4  ;;  %v315_v53 = vrot.slane %v307_v48, 4 }
  0xb4   :  { %322 = vst [vmem:[#allocation2 + $0x8] sm:$0xf0] %v314_v51 }
  0xb5   :  { %323 = vst [vmem:[#allocation2 + $0x58] sm:$0xf0] %v315_v53  ;;  %v494_v53 = vperm.slane %v1849_v60, 2 }
  0xb6   :  { %v1851_v61 = vpop.permute.xlu1 %341  ;;  %v1853_v0 = vpop.permute.xlu0 %337 }
  0xb7   :  { %v344_v3 = vsel %vm343_vm6, %v340_v43, %v1851_v61  ;;  %v345_v5 = vsel %vm343_vm6, %v1853_v0, %v340_v43 }
  0xb8   :  { %v362_v7 = vmul.f32 %v354_v54, %v344_v3  ;;  %v361_v8 = vmul.f32 %v353_v58, %v345_v5  ;;  %v1863_v12 = vpop.permute.xlu2 %476  ;;  %v394_v58 = vperm.slane %v1522_v15, 0  ;;  %v549_v3 = vperm.slane %v1890_v37, 2 }
  0xb9   :  { %v487_v14 = vsel %vm484_vm7, %v1863_v12, %v1836_v49 }
  0xba   :  { %366 = vst [vmem:[#allocation2 + $0xb8] sm:$0xf] %v362_v7  ;;  %v501_v16 = vmul.f32 %v493_v2, %v487_v14  ;;  %v395_v2 = vperm.slane %v1522_v15, 1 }
  0xbb   :  { %365 = vst [vmem:[#allocation2 + $0x78] sm:$0xf] %v361_v8 }
  0xbc   :  { %v509_v17 = vrot.slane %v501_v16, 4  ;;  %v621_v16 = vld.sshfl [vmem:[#allocation1] sm:$0xff pattern:$0x75316420] }
  0xbd   :  { %629 = vst [vmem:[#allocation2 + $0x20] sm:$0xf] %v621_v16  ;;  %v254_v16 = vperm.slane %v1803_v11, 1 }
  0xbe   :  { %517 = vst [vmem:[#allocation2 + $0x28] sm:$0xf0] %v509_v17  ;;  %v383_v20 = vpop.permute.xlu1 %382  ;;  %v438_v21 = vpop.permute.xlu0 %437  ;;  %v624_v17 = vld.sshfl [vmem:[#allocation1 + $0x18] sm:$0xff pattern:$0x75316420] }
  0xbf   :  { %v387_v23 = vsel %vm386_vm8, %v383_v20, %v1809_v31  ;;  %v388_v25 = vsel %vm386_vm8, %v1820_v38, %v383_v20  ;;  %632 = vst [vmem:[#allocation2 + $0x70] sm:$0xf] %v624_v17 }
  0xc0   :  { %v404_v26 = vmul.f32 %v396_v18, %v388_v25  ;;  %v405_v27 = vmul.f32 %v397_v19, %v387_v23  ;;  %v536_v28 = vpop.permute.xlu2 %535 }
  0xc2   :  { %v412_v32 = vrot.slane %v404_v26, 4  ;;  %v413_v33 = vrot.slane %v405_v27, 4  ;;  %v492_v27 = vperm.slane %v1849_v60, 0 }
  0xc4   :  { %420 = vst [vmem:[#allocation2 + $0x78] sm:$0xf0] %v412_v32 }
  0xc5   :  { %421 = vst [vmem:[#allocation2 + $0xb8] sm:$0xf0] %v413_v33 }
  0xc6   :  { %v1892_v39 = vpop.permute.xlu1 %439  ;;  %v1894_v41 = vpop.permute.xlu0 %435 }
  0xc7   :  { %v442_v43 = vsel %vm441_vm9, %v438_v21, %v1892_v39  ;;  %v443_v44 = vsel %vm441_vm9, %v1894_v41, %v438_v21 }
  0xc8   :  { %v460_v45 = vmul.f32 %v452_v34, %v442_v43  ;;  %v459_v46 = vmul.f32 %v451_v35, %v443_v44  ;;  %v538_v47 = vpop.permute.xlu2 %537  ;;  %v548_v44 = vperm.slane %v1890_v37, 1 }
  0xc9   :  { %v540_v48 = vsel %vm539_vm10, %v536_v28, %v538_v47 }
  0xca   :  { %464 = vst [vmem:[#allocation2 + $0x60] sm:$0xf] %v460_v45  ;;  %v558_v51 = vmul.f32 %v550_v42, %v540_v48 }
  0xcb   :  { %463 = vst [vmem:[#allocation2 + $0xc0] sm:$0xf] %v459_v46  ;;  %v658_v46 = vld [vmem:[#allocation2 + $0x20] sm:$0xf] }
  0xcc   :  { %562 = vst [vmem:[#allocation2 + $0xa0] sm:$0xf] %v558_v51  ;;  %1527 = vmatpush.msk.msra.mxu0 %vm672_vm11, %v658_v46  ;;  %v59_v46 = vperm.slane %v1715_v55, 2 }
  0xce   :  { %v481_v54 = vpop.permute.xlu1 %480 }
  0xcf   :  { %v486_v5 = vsel %vm484_vm7, %v1836_v49, %v481_v54 }
  0xd0   :  { %v502_v7 = vmul.f32 %v494_v53, %v486_v5  ;;  %v379_v8 = vpop.permute.xlu2 %378  ;;  %v534_v14 = vpop.permute.xlu0 %533  ;;  %v661_v53 = vld [vmem:[#allocation2 + $0x70] sm:$0xf] }
  0xd1   :  { %v389_v18 = vsel %vm386_vm8, %v379_v8, %v1820_v38  ;;  %v390_v19 = vsel %vm386_vm8, %v1809_v31, %v379_v8  ;;  %v541_v15 = vsel %vm539_vm10, %v534_v14, %v536_v28  ;;  %v495_v38 = vperm.slane %v1849_v60, 3  ;;  %1533 = vmatpush.msk.msra.mxu3 %vm672_vm11, %v661_v53 }
  0xd2   :  { %v510_v20 = vrot.slane %v502_v7, 4  ;;  %v402_v21 = vmul.f32 %v394_v58, %v390_v19  ;;  %v403_v49 = vmul.f32 %v395_v2, %v389_v18  ;;  %v557_v23 = vmul.f32 %v549_v3, %v541_v15 }
  0xd3   :  { %v296_v31 = vperm.slane %v1825_v40, 0  ;;  %v297_v28 = vperm.slane %v1825_v40, 1  ;;  %v547_v60 = vperm.slane %v1890_v37, 0  ;;  %v622_v37 = vld.sshfl [vmem:[#allocation1 + $0x8] sm:$0xff pattern:$0x75316420] }
  0xd4   :  { %518 = vst [vmem:[#allocation2 + $0xc0] sm:$0xf0] %v510_v20  ;;  %v410_v25 = vrot.slane %v402_v21, 4  ;;  %v411_v26 = vrot.slane %v403_v49, 4  ;;  %v157_v7 = vperm.slane %v1756_v4, 2 }
  0xd5   :  { %561 = vst [vmem:[#allocation2 + $0x98] sm:$0xf] %v557_v23  ;;  %v623_v20 = vld.sshfl [vmem:[#allocation1 + $0x10] sm:$0xff pattern:$0x75316420] }
  0xd6   :  { %418 = vst [vmem:[#allocation2 + $0x38] sm:$0xf0] %v410_v25  ;;  %v483_v32 = vpop.permute.xlu1 %482 }
  0xd7   :  { %419 = vst [vmem:[#allocation2 + $0x90] sm:$0xf0] %v411_v26  ;;  %v485_v33 = vsel %vm484_vm7, %v481_v54, %v483_v32  ;;  %v488_v34 = vsel %vm484_vm7, %v483_v32, %v1863_v12  ;;  %v57_v26 = vperm.slane %v1715_v55, 0 }
  0xd8   :  { %v500_v35 = vmul.f32 %v492_v27, %v488_v34  ;;  %v503_v42 = vmul.f32 %v495_v38, %v485_v33  ;;  %v281_v43 = vpop.permute.xlu2 %280  ;;  %v532_v45 = vpop.permute.xlu0 %531  ;;  %630 = vst [vmem:[#allocation2 + $0x10] sm:$0xf] %v622_v37 }
  0xd9   :  { %v291_v40 = vsel %vm288_vm5, %v281_v43, %v1793_v22  ;;  %v292_v48 = vsel %vm288_vm5, %v1769_v10, %v281_v43  ;;  %v542_v12 = vsel %vm539_vm10, %v532_v45, %v534_v14  ;;  %v543_v51 = vsel %vm539_vm10, %v538_v47, %v532_v45  ;;  %631 = vst [vmem:[#allocation2 + $0xc8] sm:$0xf] %v623_v20 }
  0xda   :  { %v508_v54 = vrot.slane %v500_v35, 4  ;;  %v511_v58 = vrot.slane %v503_v42, 4  ;;  %v304_v2 = vmul.f32 %v296_v31, %v292_v48  ;;  %v305_v3 = vmul.f32 %v297_v28, %v291_v40 }
  0xdb   :  { %v555_v5 = vmul.f32 %v547_v60, %v543_v51  ;;  %v556_v8 = vmul.f32 %v548_v44, %v542_v12  ;;  %v253_v14 = vperm.slane %v1803_v11, 0  ;;  %v58_v45 = vperm.slane %v1715_v55, 1 }
  0xdc   :  { %516 = vst [vmem:[#allocation2 + $0x40] sm:$0xf0] %v508_v54  ;;  %v312_v22 = vrot.slane %v304_v2, 4  ;;  %v313_v10 = vrot.slane %v305_v3, 4 }
  0xdd   :  { %519 = vst [vmem:[#allocation2 + $0x60] sm:$0xf0] %v511_v58 }
  0xde   :  { %320 = vst [vmem:[#allocation2 + $0x80] sm:$0xf0] %v312_v22  ;;  %v1943_v47 = vpop.permute.xlu1 %141 }
  0xdf   :  { %321 = vst [vmem:[#allocation2 + $0x88] sm:$0xf0] %v313_v10  ;;  %v149_v17 = vsel %vm147_vm2, %v1943_v47, %v1767_v9  ;;  %v659_v49 = vld [vmem:[#allocation2 + $0x10] sm:$0xf] }
  0xe0   :  { %559 = vst [vmem:[#allocation2 + $0xd0] sm:$0xf] %v555_v5  ;;  %v165_v18 = vmul.f32 %v157_v7, %v149_v17  ;;  %v238_v19 = vpop.permute.xlu2 %237  ;;  %v579_v15 = vpop.permute.xlu0 %578  ;;  %1529 = vmatpush.msk.msra.mxu1 %vm672_vm11, %v659_v49  ;;  %v1526_v9 = vld [vmem:[%s2424_s1 + $0x23] ss:$8 sm:$0xf]  ;;  %v199_v5 = vperm.slane %v1783_v6, 1 }
  0xe1   :  { %560 = vst [vmem:[#allocation2 + $0xa8] sm:$0xf] %v556_v8  ;;  %v248_v21 = vsel %vm245_vm4, %v238_v19, %v1815_v36  ;;  %v249_v11 = vsel %vm245_vm4, %v1805_v29, %v238_v19  ;;  %v593_v36 = vperm.slane %v1526_v9, 3  ;;  %v590_v27 = vperm.slane %v1526_v9, 0  ;;  %v660_v43 = vld [vmem:[#allocation2 + $0xc8] sm:$0xf] }
  0xe2   :  { %169 = vst [vmem:[#allocation2 + $0x30] sm:$0xf] %v165_v18  ;;  %v261_v23 = vmul.f32 %v253_v14, %v249_v11  ;;  %v262_v25 = vmul.f32 %v254_v16, %v248_v21  ;;  %1531 = vmatpush.msk.msra.mxu2 %vm672_vm11, %v660_v43  ;;  %v592_v40 = vperm.slane %v1526_v9, 2  ;;  %v449_v14 = vperm.slane %v1882_v30, 0 }
  0xe3   :  { %v450_v16 = vperm.slane %v1882_v30, 1  ;;  %v1581_v11 = vmov 0   ;;  %v662_v30 = vld [vmem:[%s2425_s3] sm:$0xf] }
  0xe4   :  { %265 = vst [vmem:[#allocation2 + $0x80] sm:$0xf] %v261_v23  ;;  %v653_v18 = vld [vmem:[#allocation2 + $0x60] sm:$0xff]  ;;  %1567 = vset.pattern.permute.xlu0 %v1581_v11  ;;  %v649_v23 = vld [vmem:[#allocation2 + $0xb8] sm:$0xff]  ;;  %1568 = vset.pattern.permute.xlu2 %v1581_v11 }
  0xe5   :  { %266 = vst [vmem:[#allocation2 + $0x88] sm:$0xf] %v262_v25  ;;  %665 = vperm.xlu0 %1567, %v662_v30  }
  0xe6   :  { %v575_v29 = vpop.permute.xlu1 %574 }
  0xe8   :  { %v41_v38 = vpop.permute.xlu2 %40  ;;  %v581_v32 = vpop.permute.xlu0 %580 }
  0xe9   :  { %v54_v31 = vsel %vm50_vm0, %v1702_v52, %v41_v38  ;;  %v583_v28 = vsel %vm582_vm12, %v579_v15, %v581_v32  ;;  %v586_v33 = vsel %vm582_vm12, %v581_v32, %v575_v29  ;;  %v591_v52 = vperm.slane %v1526_v9, 1 }
  0xea   :  { %v65_v34 = vmul.f32 %v57_v26, %v54_v31  ;;  %v601_v35 = vmul.f32 %v593_v36, %v583_v28  ;;  %v598_v42 = vmul.f32 %v590_v27, %v586_v33  ;;  %v645_v36 = vld [vmem:[#allocation2 + $0x58] sm:$0xff]  ;;  %v155_v27 = vperm.slane %v1756_v4, 0 }
  0xeb   :  { %v352_v32 = vperm.slane %v1841_v50, 1  ;;  %v2008_v33 = vld [vmem:[%s2426_s2] sm:$0xf] }
  0xec   :  { %69 = vst [vmem:[#allocation2 + $0xb0] sm:$0xf] %v65_v34  ;;  %v609_v60 = vrot.slane %v601_v35, 4  ;;  %v606_v44 = vrot.slane %v598_v42, 4  ;;  %v652_v35 = vld [vmem:[#allocation2 + $0xc0] sm:$0xff] }
  0xee   :  { %617 = vst [vmem:[#allocation2 + $0xa0] sm:$0xf0] %v609_v60  ;;  %v43_v48 = vpop.permute.xlu1 %42 }
  0xef   :  { %614 = vst [vmem:[#allocation2 + $0xd0] sm:$0xf0] %v606_v44  ;;  %v52_v12 = vsel %vm50_vm0, %v43_v48, %v1728_v59  ;;  %v53_v51 = vsel %vm50_vm0, %v41_v38, %v43_v48  ;;  %v198_v59 = vperm.slane %v1783_v6, 0  ;;  %v641_v38 = vld [vmem:[#allocation2 + $0x48] sm:$0xff] }
  0xf0   :  { %v577_v53 = vpop.permute.xlu0 %576  ;;  %v66_v37 = vmul.f32 %v58_v45, %v53_v51  ;;  %v67_v54 = vmul.f32 %v59_v46, %v52_v12  ;;  %v644_v48 = vld [vmem:[#allocation2 + $0x8] sm:$0xff]  ;;  %v101_v12 = vperm.slane %v1737_v62, 1 }
  0xf1   :  { %v584_v58 = vsel %vm582_vm12, %v577_v53, %v579_v15  ;;  %v585_v55 = vsel %vm582_vm12, %v575_v29, %v577_v53  ;;  %v156_v29 = vperm.slane %v1756_v4, 1  ;;  %v637_v4 = vld [vmem:[#allocation2 + $0x18] sm:$0xff] }
  0xf2   :  { %v599_v2 = vmul.f32 %v591_v52, %v585_v55  ;;  %v600_v3 = vmul.f32 %v592_v40, %v584_v58  ;;  %70 = vst [vmem:[#allocation2] sm:$0xf] %v66_v37 }
  0xf3   :  { %71 = vst [vmem:[#allocation2 + $0xd8] sm:$0xf] %v67_v54 }
  0xf4   :  { %v607_v22 = vrot.slane %v599_v2, 4  ;;  %v608_v10 = vrot.slane %v600_v3, 4 }
  0xf5   :  { %v657_v7 = vld [vmem:[#allocation2 + $0xa0] sm:$0xff] }
  0xf6   :  { %615 = vst [vmem:[#allocation2 + $0xa8] sm:$0xf0] %v607_v22  ;;  %v654_v8 = vld [vmem:[#allocation2 + $0xd0] sm:$0xff]  ;;  %755 = vmatpush.msra.mxu3 %v657_v7  ;;  %v183_v17 = vpop.permute.xlu1 %182 }
  0xf7   :  { %616 = vst [vmem:[#allocation2 + $0x98] sm:$0xf0] %v608_v10  ;;  %695 = vmatpush.msra.mxu0 %v654_v8  ;;  %v193_v19 = vsel %vm190_vm3, %v183_v17, %v1795_v24  ;;  %v194_v6 = vsel %vm190_vm3, %v1741_v63, %v183_v17  ;;  %v642_v10 = vld [vmem:[#allocation2 + $0x80] sm:$0xff] }
  0xf8   :  { %756 = vmatpush.msra.mxu3 %v653_v18  ;;  %v434_v15 = vpop.permute.xlu0 %433  ;;  %v206_v20 = vmul.f32 %v198_v59, %v194_v6  ;;  %v207_v21 = vmul.f32 %v199_v5, %v193_v19 }
  0xf9   :  { %v444_v49 = vsel %vm441_vm9, %v434_v15, %v1894_v41  ;;  %v445_v24 = vsel %vm441_vm9, %v1892_v39, %v434_v15  ;;  %v351_v39 = vperm.slane %v1841_v50, 0 }
  0xfa   :  { %v457_v63 = vmul.f32 %v449_v14, %v445_v24  ;;  %v458_v25 = vmul.f32 %v450_v16, %v444_v49  ;;  %v214_v9 = vrot.slane %v206_v20, 4  ;;  %757 = vmatpush.msra.mxu3 %v649_v23  ;;  %v215_v26 = vrot.slane %v207_v21, 4  ;;  %v636_v53 = vld [vmem:[#allocation2 + $0xd8] sm:$0xff] }
  0xfc   :  { %461 = vst [vmem:[#allocation2 + $0x40] sm:$0xf] %v457_v63  ;;  %758 = vmatpush.msra.mxu3 %v645_v36 }
  0xfd   :  { %462 = vst [vmem:[#allocation2 + $0x28] sm:$0xf] %v458_v25  ;;  %v655_v41 = vld [vmem:[#allocation2 + $0xa8] sm:$0xff] }
  0xfe   :  { %222 = vst [vmem:[#allocation2 + $0x50] sm:$0xf0] %v214_v9  ;;  %715 = vmatpush.msra.mxu1 %v655_v41  ;;  %v656_v31 = vld [vmem:[#allocation2 + $0x98] sm:$0xff]  ;;  %759 = vmatpush.msra.mxu3 %v641_v38  ;;  %v140_v28 = vpop.permute.xlu1 %139 }
  0xff   :  { %223 = vst [vmem:[#allocation2 + $0x68] sm:$0xf0] %v215_v26  ;;  %735 = vmatpush.msra.mxu2 %v656_v31  ;;  %v150_v34 = vsel %vm147_vm2, %v140_v28, %v1943_v47  ;;  %v151_v50 = vsel %vm147_vm2, %v1717_v56, %v140_v28  ;;  %v648_v56 = vld [vmem:[#allocation2 + $0x78] sm:$0xff] }
 0x100   :  { %760 = vmatpush.msra.mxu3 %v637_v4  ;;  %v336_v42 = vpop.permute.xlu0 %335  ;;  %v163_v43 = vmul.f32 %v155_v27, %v151_v50  ;;  %v164_v60 = vmul.f32 %v156_v29, %v150_v34 }
 0x101   :  { %736 = vmatpush.msra.mxu2 %v652_v35  ;;  %v346_v44 = vsel %vm343_vm6, %v336_v42, %v1853_v0  ;;  %v347_v45 = vsel %vm343_vm6, %v1851_v61, %v336_v42  ;;  %1534 = vmatmul.msk.f32.vlgmr.msra.gmra.mxu3 %vm668_vm13, %v2008_v33  ;;  %v640_v0 = vld [vmem:[#allocation2 + $0x30] sm:$0xff]  ;;  %v100_v61 = vperm.slane %v1737_v62, 0 }
 0x102   :  { %v359_v47 = vmul.f32 %v351_v39, %v347_v45  ;;  %v360_v46 = vmul.f32 %v352_v32, %v346_v44  ;;  %167 = vst [vmem:[#allocation2 + $0x50] sm:$0xf] %v163_v43 }
 0x103   :  { %168 = vst [vmem:[#allocation2 + $0x68] sm:$0xf] %v164_v60  ;;  %737 = vmatpush.msra.mxu2 %v648_v56  ;;  %v650_v52 = vld [vmem:[#allocation2 + $0x40] sm:$0xff] }
 0x104   :  { %363 = vst [vmem:[#allocation2 + $0x38] sm:$0xf] %v359_v47  ;;  %696 = vmatpush.msra.mxu0 %v650_v52  ;;  %v651_v40 = vld [vmem:[#allocation2 + $0x28] sm:$0xff] }
 0x105   :  { %364 = vst [vmem:[#allocation2 + $0x90] sm:$0xf] %v360_v46  ;;  %716 = vmatpush.msra.mxu1 %v651_v40  ;;  %738 = vmatpush.msra.mxu2 %v644_v48 }
 0x107   :  { %739 = vmatpush.msra.mxu2 %v640_v0 }
 0x108   :  { %v85_v51 = vpop.permute.xlu0 %84 }
 0x109   :  { %v95_v37 = vsel %vm92_vm1, %v85_v51, %v1775_v13  ;;  %v96_v54 = vsel %vm92_vm1, %v1748_v1, %v85_v51  ;;  %740 = vmatpush.msra.mxu2 %v636_v53  ;;  %v643_v13 = vld [vmem:[#allocation2 + $0x88] sm:$0xff]  ;;  %v638_v59 = vld [vmem:[#allocation2 + $0x50] sm:$0xff] }
 0x10a   :  { %v108_v58 = vmul.f32 %v100_v61, %v96_v54  ;;  %v109_v55 = vmul.f32 %v101_v12, %v95_v37  ;;  %1532 = vmatmul.msk.f32.vlgmr.msra.gmra.mxu2 %vm668_vm13, %v2008_v33  ;;  %v639_v1 = vld [vmem:[#allocation2 + $0x68] sm:$0xff] }
 0x10b   :  { %v646_v2 = vld [vmem:[#allocation2 + $0x38] sm:$0xff] }
 0x10c   :  { %v116_v3 = vrot.slane %v108_v58, 4  ;;  %v117_v62 = vrot.slane %v109_v55, 4  ;;  %697 = vmatpush.msra.mxu0 %v646_v2  ;;  %v647_v22 = vld [vmem:[#allocation2 + $0x90] sm:$0xff] }
 0x10d   :  { %717 = vmatpush.msra.mxu1 %v647_v22 }
 0x10e   :  { %124 = vst [vmem:[#allocation2 + $0xb0] sm:$0xf0] %v116_v3  ;;  %698 = vmatpush.msra.mxu0 %v642_v10 }
 0x10f   :  { %125 = vst [vmem:[#allocation2] sm:$0xf0] %v117_v62  ;;  %718 = vmatpush.msra.mxu1 %v643_v13 }
 0x110   :  { %699 = vmatpush.msra.mxu0 %v638_v59 }
 0x111   :  { %719 = vmatpush.msra.mxu1 %v639_v1 }
 0x115   :  { %v634_v5 = vld [vmem:[#allocation2 + $0xb0] sm:$0xff] }
 0x116   :  { %700 = vmatpush.msra.mxu0 %v634_v5  ;;  %v635_v7 = vld [vmem:[#allocation2] sm:$0xff] }
 0x117   :  { %720 = vmatpush.msra.mxu1 %v635_v7  ;;  %1528 = vmatmul.msk.f32.vlgmr.msra.gmra.mxu0 %vm668_vm13, %v2008_v33 }
 0x118   :  { %1530 = vmatmul.msk.f32.vlgmr.msra.gmra.mxu1 %vm668_vm13, %v2008_v33 }
 0x157   :  { %v666_v14 = vpop.permute.xlu0 %665 }
 0x184   :  { %v762_v8 = vpop.f32.mrf.mxu3 }
 0x185   :  { %v763_v16 = vadd.f32 %v762_v8, %v666_v14 }
 0x187   :  { %v770_v17 = vrot.slane %v763_v16, 4 }
 0x18d   :  { %v742_v18 = vpop.f32.mrf.mxu2 }
 0x18e   :  { %v743_v19 = vadd.f32 %v742_v18, %v666_v14 }
 0x190   :  { %v772_v6 = vsel %vm672_vm11, %v743_v19, %v770_v17 }
 0x191   :  { %v2039_v15 = vmax.f32 %v772_v6, 0.0 }
 0x193   :  { %785 = vst [vmem:[#allocation1 + $0x10] ss:$2 sm:$0xff] %v2039_v15 }
 0x194   :  { %v702_v20 = vpop.f32.mrf.mxu0 }
 0x195   :  { %v722_v21 = vpop.f32.mrf.mxu1  ;;  %v703_v30 = vadd.f32 %v702_v20, %v666_v14 }
 0x196   :  { %v723_v11 = vadd.f32 %v722_v21, %v666_v14 }
 0x198   :  { %v769_v49 = vrot.slane %v723_v11, 4 }
 0x19a   :  { %v771_v24 = vsel %vm672_vm11, %v703_v30, %v769_v49  ;;  %v789_v23 = vld.sshfl [vmem:[#allocation1 + $0x18] sm:$0xff pattern:$0x75316420]  ;;  %v788_v63 = vld.sshfl [vmem:[#allocation1 + $0x10] sm:$0xff pattern:$0x75316420] }
 0x19b   :  { %v2043_v25 = vmax.f32 %v771_v24, 0.0  ;;  %800 = vrot.lane.b32.xlu0 %v789_v23, %s1569_s25  ;;  %798 = vrot.lane.b32.xlu2 %v788_v63, %s1569_s25  ;;  %826 = vst [vmem:[#allocation1 + $0x10] ss:$2 sm:$0xff] %v2039_v15  ;;  %v2146_v63 = vld [vmem:[%s2424_s1 + $0x2] ss:$8 sm:$0xf] }
 0x19d   :  { %783 = vst [vmem:[#allocation1] ss:$2 sm:$0xff] %v2043_v25 }
 0x1a2   :  { %v829_v9 = vld.sshfl [vmem:[#allocation1 + $0x10] sm:$0xff pattern:$0x75316420]  ;;  %v830_v26 = vld.sshfl [vmem:[#allocation1 + $0x18] sm:$0xff pattern:$0x75316420] }
 0x1a3   :  { %839 = vrot.lane.b32.xlu0 %v829_v9, %s1570_s26  ;;  %879 = vst [vmem:[#allocation1 + $0x10] ss:$2 sm:$0xff] %v2039_v15  ;;  %v904_v9 = vperm.slane %v2146_v63, 2 }
 0x1a4   :  { %v2051_v36 = vld.sshfl [vmem:[#allocation1] sm:$0xff pattern:$0x75316420]  ;;  %v2053_v27 = vld.sshfl [vmem:[#allocation1 + $0x8] sm:$0xff pattern:$0x75316420] }
 0x1a5   :  { %824 = vst [vmem:[#allocation1] ss:$2 sm:$0xff] %v2043_v25 }
 0x1aa   :  { %v883_v29 = vld.sshfl [vmem:[#allocation1 + $0x18] sm:$0xff pattern:$0x75316420]  ;;  %v882_v41 = vld.sshfl [vmem:[#allocation1 + $0x10] sm:$0xff pattern:$0x75316420] }
 0x1ab   :  { %894 = vrot.lane.b32.xlu0 %v883_v29, %s1571_s27  ;;  %920 = vst [vmem:[#allocation1 + $0x10] ss:$2 sm:$0xff] %v2039_v15 }
 0x1ac   :  { %v828_v38 = vld.sshfl [vmem:[#allocation1 + $0x8] sm:$0xff pattern:$0x75316420]  ;;  %v2058_v39 = vld.sshfl [vmem:[#allocation1] sm:$0xff pattern:$0x75316420] }
 0x1ad   :  { %837 = vrot.lane.b32.xlu1 %v828_v38, %s1570_s26  ;;  %877 = vst [vmem:[#allocation1] ss:$2 sm:$0xff] %v2043_v25  ;;  %v2159_v38 = vld [vmem:[%s2424_s1 + $0x1] ss:$8 sm:$0xf] }
 0x1b2   :  { %v923_v32 = vld.sshfl [vmem:[#allocation1 + $0x10] sm:$0xff pattern:$0x75316420]  ;;  %v924_v31 = vld.sshfl [vmem:[#allocation1 + $0x18] sm:$0xff pattern:$0x75316420] }
 0x1b3   :  { %973 = vst [vmem:[#allocation1 + $0x10] ss:$2 sm:$0xff] %v2039_v15 }
 0x1b4   :  { %v881_v28 = vld.sshfl [vmem:[#allocation1 + $0x8] sm:$0xff pattern:$0x75316420]  ;;  %v2063_v33 = vld.sshfl [vmem:[#allocation1] sm:$0xff pattern:$0x75316420] }
 0x1b5   :  { %841 = vrot.lane.b32.xlu1 %v830_v26, %s1570_s26  ;;  %890 = vrot.lane.b32.xlu2 %v881_v28, %s1571_s27  ;;  %918 = vst [vmem:[#allocation1] ss:$2 sm:$0xff] %v2043_v25  ;;  %v851_v28 = vperm.slane %v2159_v38, 2 }
 0x1ba   :  { %v976_v4 = vld.sshfl [vmem:[#allocation1 + $0x10] sm:$0xff pattern:$0x75316420]  ;;  %v977_v34 = vld.sshfl [vmem:[#allocation1 + $0x18] sm:$0xff pattern:$0x75316420] }
 0x1bb   :  { %986 = vrot.lane.b32.xlu0 %v976_v4, %s1573_s29  ;;  %1014 = vst [vmem:[#allocation1 + $0x10] ss:$2 sm:$0xff] %v2039_v15 }
 0x1bc   :  { %v922_v50 = vld.sshfl [vmem:[#allocation1 + $0x8] sm:$0xff pattern:$0x75316420]  ;;  %v2070_v35 = vld.sshfl [vmem:[#allocation1] sm:$0xff pattern:$0x75316420] }
 0x1bd   :  { %892 = vrot.lane.b32.xlu2 %v882_v41, %s1571_s27  ;;  %931 = vrot.lane.b32.xlu1 %v922_v50, %s1572_s28  ;;  %971 = vst [vmem:[#allocation1] ss:$2 sm:$0xff] %v2043_v25 }
 0x1c2   :  { %v1018_v42 = vld.sshfl [vmem:[#allocation1 + $0x18] sm:$0xff pattern:$0x75316420]  ;;  %v1017_v43 = vld.sshfl [vmem:[#allocation1 + $0x10] sm:$0xff pattern:$0x75316420] }
 0x1c3   :  { %1067 = vst [vmem:[#allocation1 + $0x10] ss:$2 sm:$0xff] %v2039_v15 }
 0x1c4   :  { %v975_v60 = vld.sshfl [vmem:[#allocation1 + $0x8] sm:$0xff pattern:$0x75316420]  ;;  %v2076_v44 = vld.sshfl [vmem:[#allocation1] sm:$0xff pattern:$0x75316420] }
 0x1c5   :  { %935 = vrot.lane.b32.xlu2 %v924_v31, %s1572_s28  ;;  %933 = vrot.lane.b32.xlu1 %v923_v32, %s1572_s28  ;;  %1012 = vst [vmem:[#allocation1] ss:$2 sm:$0xff] %v2043_v25  ;;  %v905_v32 = vperm.slane %v2146_v63, 3 }
 0x1ca   :  { %v1070_v45 = vld.sshfl [vmem:[#allocation1 + $0x10] sm:$0xff pattern:$0x75316420]  ;;  %v1071_v47 = vld.sshfl [vmem:[#allocation1 + $0x18] sm:$0xff pattern:$0x75316420] }
 0x1cb   :  { %1108 = vst [vmem:[#allocation1 + $0x10] ss:$2 sm:$0xff] %v2039_v15 }
 0x1cc   :  { %v1015_v46 = vld.sshfl [vmem:[#allocation1] sm:$0xff pattern:$0x75316420]  ;;  %v1016_v56 = vld.sshfl [vmem:[#allocation1 + $0x8] sm:$0xff pattern:$0x75316420] }
 0x1cd   :  { %988 = vrot.lane.b32.xlu1 %v977_v34, %s1573_s29  ;;  %984 = vrot.lane.b32.xlu2 %v975_v60, %s1573_s29  ;;  %1065 = vst [vmem:[#allocation1] ss:$2 sm:$0xff] %v2043_v25 }
 0x1ce   :  { %1023 = vrot.lane.b32.xlu0 %v1015_v46, %s1574_s30  ;;  %v2196_v46 = vld [vmem:[%s2424_s1 + $0x4] ss:$8 sm:$0xf] }
 0x1d2   :  { %v1111_v52 = vld.sshfl [vmem:[#allocation1 + $0x10] sm:$0xff pattern:$0x75316420]  ;;  %v1112_v40 = vld.sshfl [vmem:[#allocation1 + $0x18] sm:$0xff pattern:$0x75316420] }
 0x1d3   :  { %1161 = vst [vmem:[#allocation1 + $0x10] ss:$2 sm:$0xff] %v2039_v15 }
 0x1d4   :  { %v1069_v48 = vld.sshfl [vmem:[#allocation1 + $0x8] sm:$0xff pattern:$0x75316420]  ;;  %v2087_v0 = vld.sshfl [vmem:[#allocation1] sm:$0xff pattern:$0x75316420] }
 0x1d5   :  { %1029 = vrot.lane.b32.xlu1 %v1018_v42, %s1574_s30  ;;  %1025 = vrot.lane.b32.xlu2 %v1016_v56, %s1574_s30  ;;  %1106 = vst [vmem:[#allocation1] ss:$2 sm:$0xff] %v2043_v25 }
 0x1d6   :  { %1027 = vrot.lane.b32.xlu0 %v1017_v43, %s1574_s30 }
 0x1da   :  { %v1165_v61 = vld.sshfl [vmem:[#allocation1 + $0x18] sm:$0xff pattern:$0x75316420]  ;;  %v1164_v12 = vld.sshfl [vmem:[#allocation1 + $0x10] sm:$0xff pattern:$0x75316420] }
 0x1db   :  { %1202 = vst [vmem:[#allocation1 + $0x10] ss:$2 sm:$0xff] %v2039_v15 }
 0x1dc   :  { %v1109_v51 = vld.sshfl [vmem:[#allocation1] sm:$0xff pattern:$0x75316420]  ;;  %v1110_v53 = vld.sshfl [vmem:[#allocation1 + $0x8] sm:$0xff pattern:$0x75316420] }
 0x1dd   :  { %1080 = vrot.lane.b32.xlu2 %v1070_v45, %s1575_s7  ;;  %1119 = vrot.lane.b32.xlu1 %v1110_v53, %s1576_s8  ;;  %1159 = vst [vmem:[#allocation1] ss:$2 sm:$0xff] %v2043_v25 }
 0x1de   :  { %1078 = vrot.lane.b32.xlu0 %v1069_v48, %s1575_s7 }
 0x1e2   :  { %v1205_v37 = vld.sshfl [vmem:[#allocation1 + $0x10] sm:$0xff pattern:$0x75316420]  ;;  %v1206_v54 = vld.sshfl [vmem:[#allocation1 + $0x18] sm:$0xff pattern:$0x75316420] }
 0x1e3   :  { %1255 = vst [vmem:[#allocation1 + $0x10] ss:$2 sm:$0xff] %v2039_v15 }
 0x1e4   :  { %v1163_v58 = vld.sshfl [vmem:[#allocation1 + $0x8] sm:$0xff pattern:$0x75316420]  ;;  %v1162_v55 = vld.sshfl [vmem:[#allocation1] sm:$0xff pattern:$0x75316420] }
 0x1e5   :  { %1123 = vrot.lane.b32.xlu1 %v1112_v40, %s1576_s8  ;;  %1172 = vrot.lane.b32.xlu2 %v1163_v58, %s1577_s9  ;;  %1200 = vst [vmem:[#allocation1] ss:$2 sm:$0xff] %v2043_v25 }
 0x1e6   :  { %1082 = vrot.lane.b32.xlu0 %v1071_v47, %s1575_s7 }
 0x1ea   :  { %v1258_v2 = vld.sshfl [vmem:[#allocation1 + $0x10] sm:$0xff pattern:$0x75316420]  ;;  %v1259_v3 = vld.sshfl [vmem:[#allocation1 + $0x18] sm:$0xff pattern:$0x75316420] }
 0x1eb   :  { %1296 = vst [vmem:[#allocation1 + $0x10] ss:$2 sm:$0xff] %v2039_v15 }
 0x1ec   :  { %v1204_v62 = vld.sshfl [vmem:[#allocation1 + $0x8] sm:$0xff pattern:$0x75316420]  ;;  %v1203_v22 = vld.sshfl [vmem:[#allocation1] sm:$0xff pattern:$0x75316420] }
 0x1ed   :  { %1174 = vrot.lane.b32.xlu2 %v1164_v12, %s1577_s9  ;;  %1170 = vrot.lane.b32.xlu1 %v1162_v55, %s1577_s9  ;;  %1253 = vst [vmem:[#allocation1] ss:$2 sm:$0xff] %v2043_v25  ;;  %v2209_v12 = vld [vmem:[%s2424_s1 + $0x3] ss:$8 sm:$0xf] }
 0x1ee   :  { %1117 = vrot.lane.b32.xlu0 %v1109_v51, %s1576_s8  ;;  %v945_v51 = vperm.slane %v2209_v12, 2  ;;  %v946_v53 = vperm.slane %v2209_v12, 3 }
 0x1f2   :  { %v1299_v10 = vld.sshfl [vmem:[#allocation1 + $0x10] sm:$0xff pattern:$0x75316420]  ;;  %v1300_v13 = vld.sshfl [vmem:[#allocation1 + $0x18] sm:$0xff pattern:$0x75316420] }
 0x1f3   :  { %1349 = vst [vmem:[#allocation1 + $0x10] ss:$2 sm:$0xff] %v2039_v15  ;;  %v2127_v15 = vld [vmem:[%s2424_s1] ss:$8 sm:$0xf] }
 0x1f4   :  { %v1257_v59 = vld.sshfl [vmem:[#allocation1 + $0x8] sm:$0xff pattern:$0x75316420]  ;;  %v1256_v1 = vld.sshfl [vmem:[#allocation1] sm:$0xff pattern:$0x75316420] }
 0x1f5   :  { %1217 = vrot.lane.b32.xlu2 %v1206_v54, %s1578_s10  ;;  %1213 = vrot.lane.b32.xlu1 %v1204_v62, %s1578_s10  ;;  %1294 = vst [vmem:[#allocation1] ss:$2 sm:$0xff] %v2043_v25  ;;  %v2122_v6 = vpop.permute.xlu2 %798  ;;  %v811_v20 = vperm.slane %v2127_v15, 3 }
 0x1f6   :  { %1121 = vrot.lane.b32.xlu0 %v1111_v52, %s1576_s8  ;;  %v998_v52 = vperm.slane %v2196_v46, 2 }
 0x1fa   :  { %v1352_v5 = vld.sshfl [vmem:[#allocation1 + $0x10] sm:$0xff pattern:$0x75316420]  ;;  %v1353_v7 = vld.sshfl [vmem:[#allocation1 + $0x18] sm:$0xff pattern:$0x75316420] }
 0x1fb   :  { %1360 = vst [vmem:[#allocation2 + $0xc8] sm:$0xf] %v1352_v5 }
 0x1fc   :  { %1361 = vst [vmem:[#allocation2 + $0x70] sm:$0xf] %v1353_v7  ;;  %v1298_v8 = vld.sshfl [vmem:[#allocation1 + $0x8] sm:$0xff pattern:$0x75316420] }
 0x1fd   :  { %1211 = vrot.lane.b32.xlu1 %v1203_v22, %s1578_s10  ;;  %1266 = vrot.lane.b32.xlu2 %v1257_v59, %s1579_s11  ;;  %v1297_v14 = vld.sshfl [vmem:[#allocation1] sm:$0xff pattern:$0x75316420] }
 0x1fe   :  { %1176 = vrot.lane.b32.xlu0 %v1165_v61, %s1577_s9  ;;  %1347 = vst [vmem:[#allocation1] ss:$2 sm:$0xff] %v2043_v25  ;;  %v1539_v22 = vld [vmem:[%s2424_s1 + $0x5] ss:$8 sm:$0xf] }
 0x202   :  { %v1389_v16 = vld [vmem:[#allocation2 + $0xc8] sm:$0xf] }
 0x203   :  { %1550 = vmatpush.msk.msrb.mxu2 %vm672_vm11, %v1389_v16  ;;  %v1390_v17 = vld [vmem:[#allocation2 + $0x70] sm:$0xf] }
 0x204   :  { %1552 = vmatpush.msk.msrb.mxu3 %vm672_vm11, %v1390_v17  ;;  %v2233_v17 = vld [vmem:[%s2424_s1 + $0x20] ss:$8 sm:$0xf] }
 0x205   :  { %1215 = vrot.lane.b32.xlu1 %v1205_v37, %s1578_s10  ;;  %1264 = vrot.lane.b32.xlu2 %v1256_v1, %s1579_s11  ;;  %v1350_v18 = vld.sshfl [vmem:[#allocation1] sm:$0xff pattern:$0x75316420]  ;;  %v1351_v19 = vld.sshfl [vmem:[#allocation1 + $0x8] sm:$0xff pattern:$0x75316420] }
 0x206   :  { %1268 = vrot.lane.b32.xlu0 %v1258_v2, %s1579_s11  ;;  %1358 = vst [vmem:[#allocation2 + $0x20] sm:$0xf] %v1350_v18 }
 0x207   :  { %1359 = vst [vmem:[#allocation2 + $0x10] sm:$0xf] %v1351_v19  ;;  %v1037_v19 = vperm.slane %v1539_v22, 0 }
 0x20d   :  { %v2130_v21 = vpop.permute.xlu0 %800  ;;  %1270 = vrot.lane.b32.xlu1 %v1259_v3, %s1579_s11  ;;  %1307 = vrot.lane.b32.xlu2 %v1298_v8, %s1580_s12  ;;  %v1387_v11 = vld [vmem:[#allocation2 + $0x20] sm:$0xf] }
 0x20e   :  { %v802_v30 = vsel %vm50_vm0, %v2122_v6, %v2130_v21  ;;  %1305 = vrot.lane.b32.xlu0 %v1297_v14, %s1580_s12  ;;  %1546 = vmatpush.msk.msrb.mxu0 %vm672_vm11, %v1387_v11  ;;  %v1388_v49 = vld [vmem:[#allocation2 + $0x10] sm:$0xf]  ;;  %v1039_v11 = vperm.slane %v1539_v22, 2 }
 0x20f   :  { %v819_v24 = vmul.f32 %v811_v20, %v802_v30  ;;  %1548 = vmatpush.msk.msrb.mxu1 %vm672_vm11, %v1388_v49  ;;  %v2141_v23 = vpop.permute.xlu2 %890  ;;  %v1186_v20 = vperm.slane %v2233_v17, 2  ;;  %v1040_v30 = vperm.slane %v1539_v22, 3 }
 0x211   :  { %823 = vst [vmem:[#allocation2 + $0x18] sm:$0xf] %v819_v24 }
 0x215   :  { %v840_v25 = vpop.permute.xlu0 %839  ;;  %1309 = vrot.lane.b32.xlu1 %v1299_v10, %s1580_s12  ;;  %1311 = vrot.lane.b32.xlu2 %v1300_v13, %s1580_s12  ;;  %v999_v10 = vperm.slane %v2196_v46, 3  ;;  %v1038_v13 = vperm.slane %v1539_v22, 1 }
 0x216   :  { %929 = vrot.lane.b32.xlu0 %v2070_v35, %s1572_s28 }
 0x217   :  { %v893_v26 = vpop.permute.xlu2 %892 }
 0x218   :  { %v897_v29 = vsel %vm147_vm2, %v2141_v23, %v893_v26 }
 0x219   :  { %v912_v41 = vmul.f32 %v904_v9, %v897_v29 }
 0x21b   :  { %916 = vst [vmem:[#allocation2 + $0x30] sm:$0xf] %v912_v41 }
 0x21d   :  { %v2162_v31 = vpop.permute.xlu0 %894  ;;  %1076 = vrot.lane.b32.xlu1 %v2087_v0, %s1575_s7  ;;  %796 = vrot.lane.b32.xlu2 %v2053_v27, %s1569_s25 }
 0x21e   :  { %v896_v4 = vsel %vm147_vm2, %v893_v26, %v2162_v31  ;;  %888 = vrot.lane.b32.xlu0 %v2063_v33, %s1571_s27  ;;  %v852_v33 = vperm.slane %v2159_v38, 3 }
 0x21f   :  { %v913_v34 = vmul.f32 %v905_v32, %v896_v4  ;;  %v2174_v50 = vpop.permute.xlu1 %837  ;;  %v2176_v35 = vpop.permute.xlu2 %935 }
 0x220   :  { %v844_v42 = vsel %vm92_vm1, %v2174_v50, %v840_v25 }
 0x221   :  { %917 = vst [vmem:[#allocation2 + $0x48] sm:$0xf] %v913_v34  ;;  %v859_v27 = vmul.f32 %v851_v28, %v844_v42 }
 0x223   :  { %v867_v43 = vrot.slane %v859_v27, 4  ;;  %v2250_v27 = vld [vmem:[%s2424_s1 + $0x6] ss:$8 sm:$0xf] }
 0x225   :  { %875 = vst [vmem:[#allocation2 + $0xd8] sm:$0xf0] %v867_v43  ;;  %982 = vrot.lane.b32.xlu1 %v2076_v44, %s1573_s29  ;;  %835 = vrot.lane.b32.xlu2 %v2058_v39, %s1570_s26 }
 0x227   :  { %v2186_v60 = vpop.permute.xlu1 %841  ;;  %v2188_v45 = vpop.permute.xlu2 %984 }
 0x228   :  { %v843_v47 = vsel %vm92_vm1, %v840_v25, %v2186_v60 }
 0x229   :  { %v860_v56 = vmul.f32 %v852_v33, %v843_v47  ;;  %v1092_v47 = vperm.slane %v2250_v27, 2 }
 0x22b   :  { %v868_v44 = vrot.slane %v860_v56, 4 }
 0x22d   :  { %876 = vst [vmem:[#allocation2 + $0x18] sm:$0xf0] %v868_v44  ;;  %v987_v39 = vpop.permute.xlu0 %986  ;;  %794 = vrot.lane.b32.xlu1 %v2051_v36, %s1569_s25 }
 0x22e   :  { %v991_v40 = vsel %vm245_vm4, %v2188_v45, %v987_v39 }
 0x22f   :  { %v1006_v48 = vmul.f32 %v998_v52, %v991_v40  ;;  %v2204_v0 = vpop.permute.xlu1 %931  ;;  %v1026_v61 = vpop.permute.xlu2 %1025 }
 0x231   :  { %1010 = vst [vmem:[#allocation2 + $0x8] sm:$0xf] %v1006_v48  ;;  %v1093_v48 = vperm.slane %v2250_v27, 3 }
 0x237   :  { %v934_v37 = vpop.permute.xlu1 %933  ;;  %v1081_v36 = vpop.permute.xlu2 %1080 }
 0x238   :  { %v937_v54 = vsel %vm190_vm3, %v934_v37, %v2176_v35  ;;  %v938_v58 = vsel %vm190_vm3, %v2204_v0, %v934_v37 }
 0x239   :  { %v953_v55 = vmul.f32 %v945_v51, %v938_v58  ;;  %v954_v2 = vmul.f32 %v946_v53, %v937_v54  ;;  %v2271_v58 = vld [vmem:[%s2424_s1 + $0x22] ss:$8 sm:$0xf] }
 0x23b   :  { %v961_v3 = vrot.slane %v953_v55, 4  ;;  %v962_v62 = vrot.slane %v954_v2, 4  ;;  %v1541_v55 = vld [vmem:[%s2424_s1 + $0x7] ss:$8 sm:$0xf]  ;;  %v1185_v2 = vperm.slane %v2233_v17, 1 }
 0x23c   :  { %v1132_v22 = vperm.slane %v1541_v55, 1 }
 0x23d   :  { %969 = vst [vmem:[#allocation2 + $0x30] sm:$0xf0] %v961_v3  ;;  %v1279_v3 = vperm.slane %v2271_v58, 1 }
 0x23e   :  { %970 = vst [vmem:[#allocation2 + $0x48] sm:$0xf0] %v962_v62  ;;  %v1131_v62 = vperm.slane %v1541_v55, 0 }
 0x23f   :  { %v2223_v59 = vpop.permute.xlu1 %988  ;;  %v1173_v1 = vpop.permute.xlu2 %1172 }
 0x240   :  { %v990_v5 = vsel %vm245_vm4, %v987_v39, %v2223_v59  ;;  %v1024_v7 = vpop.permute.xlu0 %1023 }
 0x241   :  { %v1007_v8 = vmul.f32 %v999_v10, %v990_v5  ;;  %v1033_v14 = vsel %vm288_vm5, %v1024_v7, %v1026_v61 }
 0x242   :  { %v1046_v16 = vmul.f32 %v1038_v13, %v1033_v14 }
 0x243   :  { %1011 = vst [vmem:[#allocation2 + $0x58] sm:$0xf] %v1007_v8 }
 0x244   :  { %v1054_v18 = vrot.slane %v1046_v16, 4 }
 0x246   :  { %1062 = vst [vmem:[#allocation2 + $0x88] sm:$0xf0] %v1054_v18 }
 0x247   :  { %v1030_v49 = vpop.permute.xlu1 %1029  ;;  %v2236_v24 = vpop.permute.xlu2 %1174 }
 0x248   :  { %v1034_v25 = vsel %vm288_vm5, %v1030_v49, %v1024_v7  ;;  %v1028_v9 = vpop.permute.xlu0 %1027  ;;  %v1179_v26 = vsel %vm441_vm9, %v1173_v1, %v2236_v24 }
 0x249   :  { %v1045_v29 = vmul.f32 %v1037_v19, %v1034_v25  ;;  %v1031_v41 = vsel %vm288_vm5, %v1028_v9, %v1030_v49  ;;  %v1032_v32 = vsel %vm288_vm5, %v1026_v61, %v1028_v9  ;;  %v1194_v28 = vmul.f32 %v1186_v20, %v1179_v26 }
 0x24a   :  { %v1047_v4 = vmul.f32 %v1039_v11, %v1032_v32  ;;  %v1048_v34 = vmul.f32 %v1040_v30, %v1031_v41  ;;  %v1134_v49 = vperm.slane %v1541_v55, 3 }
 0x24b   :  { %v1053_v42 = vrot.slane %v1045_v29, 4  ;;  %1198 = vst [vmem:[#allocation2 + $0xc0] sm:$0xf] %v1194_v28 }
 0x24c   :  { %v1055_v43 = vrot.slane %v1047_v4, 4  ;;  %v1056_v33 = vrot.slane %v1048_v34, 4  ;;  %v1543_v4 = vld [vmem:[%s2424_s1 + $0x21] ss:$8 sm:$0xf] }
 0x24d   :  { %1061 = vst [vmem:[#allocation2 + $0x80] sm:$0xf0] %v1053_v42 }
 0x24e   :  { %1063 = vst [vmem:[#allocation2 + $0x8] sm:$0xf0] %v1055_v43  ;;  %v1225_v43 = vperm.slane %v1543_v4, 0 }
 0x24f   :  { %1064 = vst [vmem:[#allocation2 + $0x58] sm:$0xf0] %v1056_v33  ;;  %v1120_v56 = vpop.permute.xlu1 %1119  ;;  %v2253_v44 = vpop.permute.xlu2 %1217  ;;  %v1226_v33 = vperm.slane %v1543_v4, 1 }
 0x250   :  { %v2255_v52 = vpop.permute.xlu0 %1078 }
 0x251   :  { %v1085_v39 = vsel %vm343_vm6, %v2255_v52, %v1081_v36 }
 0x252   :  { %v1100_v40 = vmul.f32 %v1092_v47, %v1085_v39  ;;  %v1184_v47 = vperm.slane %v2233_v17, 0  ;;  %v1187_v39 = vperm.slane %v2233_v17, 3 }
 0x254   :  { %1104 = vst [vmem:[#allocation2 + $0x78] sm:$0xf] %v1100_v40 }
 0x257   :  { %v1124_v61 = vpop.permute.xlu1 %1123  ;;  %v2261_v51 = vpop.permute.xlu2 %1266 }
 0x258   :  { %v2263_v53 = vpop.permute.xlu0 %1082 }
 0x259   :  { %v1084_v37 = vsel %vm343_vm6, %v1081_v36, %v2263_v53 }
 0x25a   :  { %v1101_v54 = vmul.f32 %v1093_v48, %v1084_v37 }
 0x25c   :  { %1105 = vst [vmem:[#allocation2 + $0xb8] sm:$0xf] %v1101_v54 }
 0x25f   :  { %v1171_v10 = vpop.permute.xlu1 %1170  ;;  %v2278_v13 = vpop.permute.xlu2 %1264 }
 0x260   :  { %v1118_v36 = vpop.permute.xlu0 %1117  ;;  %v1180_v5 = vsel %vm441_vm9, %v1171_v10, %v1173_v1  ;;  %v1274_v7 = vsel %vm539_vm10, %v2278_v13, %v2261_v51  ;;  %v1133_v1 = vperm.slane %v1541_v55, 2 }
 0x261   :  { %v1127_v8 = vsel %vm386_vm8, %v1118_v36, %v1120_v56  ;;  %v1128_v14 = vsel %vm386_vm8, %v1124_v61, %v1118_v36  ;;  %v1193_v16 = vmul.f32 %v1185_v2, %v1180_v5  ;;  %v1287_v18 = vmul.f32 %v1279_v3, %v1274_v7 }
 0x262   :  { %v1139_v19 = vmul.f32 %v1131_v62, %v1128_v14  ;;  %v1140_v20 = vmul.f32 %v1132_v22, %v1127_v8  ;;  %v1227_v5 = vperm.slane %v1543_v4, 2  ;;  %v1228_v7 = vperm.slane %v1543_v4, 3 }
 0x263   :  { %1197 = vst [vmem:[#allocation2 + $0x28] sm:$0xf] %v1193_v16  ;;  %v810_v8 = vperm.slane %v2127_v15, 2  ;;  %v1280_v14 = vperm.slane %v2271_v58, 2 }
 0x264   :  { %v1147_v11 = vrot.slane %v1139_v19, 4  ;;  %v1148_v30 = vrot.slane %v1140_v20, 4  ;;  %1291 = vst [vmem:[#allocation2 + $0xa8] sm:$0xf] %v1287_v18 }
 0x266   :  { %1155 = vst [vmem:[#allocation2 + $0x38] sm:$0xf0] %v1147_v11 }
 0x267   :  { %1156 = vst [vmem:[#allocation2 + $0x90] sm:$0xf0] %v1148_v30  ;;  %v1214_v25 = vpop.permute.xlu1 %1213  ;;  %v2290_v9 = vpop.permute.xlu2 %1307 }
 0x268   :  { %v1122_v26 = vpop.permute.xlu0 %1121 }
 0x269   :  { %v1125_v29 = vsel %vm386_vm8, %v1122_v26, %v1124_v61  ;;  %v1126_v41 = vsel %vm386_vm8, %v1120_v56, %v1122_v26 }
 0x26a   :  { %v1141_v32 = vmul.f32 %v1133_v1, %v1126_v41  ;;  %v1142_v28 = vmul.f32 %v1134_v49, %v1125_v29 }
 0x26c   :  { %v1149_v34 = vrot.slane %v1141_v32, 4  ;;  %v1150_v42 = vrot.slane %v1142_v28, 4  ;;  %v849_v32 = vperm.slane %v2159_v38, 0 }
 0x26e   :  { %1157 = vst [vmem:[#allocation2 + $0x78] sm:$0xf0] %v1149_v34 }
 0x26f   :  { %1158 = vst [vmem:[#allocation2 + $0xb8] sm:$0xf0] %v1150_v42  ;;  %v1212_v40 = vpop.permute.xlu1 %1211  ;;  %v2301_v48 = vpop.permute.xlu2 %1311 }
 0x270   :  { %v1177_v56 = vpop.permute.xlu0 %1176  ;;  %v1221_v61 = vsel %vm484_vm7, %v1212_v40, %v1214_v25  ;;  %v1222_v37 = vsel %vm484_vm7, %v2253_v44, %v1212_v40 }
 0x271   :  { %v1178_v54 = vsel %vm441_vm9, %v2236_v24, %v1177_v56  ;;  %v1181_v55 = vsel %vm441_vm9, %v1177_v56, %v1171_v10  ;;  %v1233_v17 = vmul.f32 %v1225_v43, %v1222_v37  ;;  %v1234_v2 = vmul.f32 %v1226_v33, %v1221_v61 }
 0x272   :  { %v1192_v3 = vmul.f32 %v1184_v47, %v1181_v55  ;;  %v1195_v62 = vmul.f32 %v1187_v39, %v1178_v54 }
 0x273   :  { %v1241_v22 = vrot.slane %v1233_v17, 4  ;;  %v1242_v36 = vrot.slane %v1234_v2, 4 }
 0x274   :  { %1196 = vst [vmem:[#allocation2 + $0x40] sm:$0xf] %v1192_v3 }
 0x275   :  { %1199 = vst [vmem:[#allocation2 + $0x60] sm:$0xf] %v1195_v62 }
 0x276   :  { %1249 = vst [vmem:[#allocation2 + $0x40] sm:$0xf0] %v1241_v22  ;;  %v943_v22 = vperm.slane %v2209_v12, 0 }
 0x277   :  { %1250 = vst [vmem:[#allocation2 + $0x28] sm:$0xf0] %v1242_v36  ;;  %v1216_v24 = vpop.permute.xlu1 %1215  ;;  %v2315_v16 = vpop.permute.xlu2 %796  ;;  %v944_v36 = vperm.slane %v2209_v12, 1 }
 0x278   :  { %v1269_v10 = vpop.permute.xlu0 %1268  ;;  %v1219_v18 = vsel %vm484_vm7, %v1216_v24, %v2253_v44  ;;  %v1220_v19 = vsel %vm484_vm7, %v1214_v25, %v1216_v24  ;;  %v803_v20 = vsel %vm50_vm0, %v2315_v16, %v2122_v6  ;;  %v1545_v44 = vld [vmem:[%s2424_s1 + $0x23] ss:$8 sm:$0xf]  ;;  %v1278_v25 = vperm.slane %v2271_v58, 0 }
 0x279   :  { %v1273_v11 = vsel %vm539_vm10, %v2261_v51, %v1269_v10  ;;  %v1235_v30 = vmul.f32 %v1227_v5, %v1220_v19  ;;  %v1236_v1 = vmul.f32 %v1228_v7, %v1219_v18  ;;  %v818_v49 = vmul.f32 %v810_v8, %v803_v20 }
 0x27a   :  { %v1288_v26 = vmul.f32 %v1280_v14, %v1273_v11  ;;  %v1281_v6 = vperm.slane %v2271_v58, 3  ;;  %v850_v51 = vperm.slane %v2159_v38, 1  ;;  %v1319_v34 = vperm.slane %v1545_v44, 0 }
 0x27b   :  { %v1243_v29 = vrot.slane %v1235_v30, 4  ;;  %v1244_v41 = vrot.slane %v1236_v1, 4  ;;  %822 = vst [vmem:[#allocation2 + $0xd8] sm:$0xf] %v818_v49  ;;  %v1320_v42 = vperm.slane %v1545_v44, 1  ;;  %v1321_v3 = vperm.slane %v1545_v44, 2 }
 0x27c   :  { %1292 = vst [vmem:[#allocation2 + $0x98] sm:$0xf] %v1288_v26  ;;  %v1322_v62 = vperm.slane %v1545_v44, 3  ;;  %v1091_v49 = vperm.slane %v2250_v27, 1  ;;  %v1391_v26 = vld [vmem:[%s2427_s5] sm:$0xf] }
 0x27d   :  { %1251 = vst [vmem:[#allocation2 + $0xc0] sm:$0xf0] %v1243_v29  ;;  %v902_v29 = vperm.slane %v2146_v63, 0  ;;  %1394 = vperm.xlu2 %1568, %v1391_v26  }
 0x27e   :  { %1252 = vst [vmem:[#allocation2 + $0x60] sm:$0xf0] %v1244_v41 }
 0x27f   :  { %v1271_v28 = vpop.permute.xlu1 %1270  ;;  %v836_v4 = vpop.permute.xlu2 %835 }
 0x280   :  { %v1272_v43 = vsel %vm539_vm10, %v1269_v10, %v1271_v28  ;;  %v1275_v33 = vsel %vm539_vm10, %v1271_v28, %v2278_v13  ;;  %v845_v58 = vsel %vm92_vm1, %v836_v4, %v2174_v50  ;;  %v846_v38 = vsel %vm92_vm1, %v2186_v60, %v836_v4  ;;  %v1306_v47 = vpop.permute.xlu0 %1305 }
 0x281   :  { %v1286_v39 = vmul.f32 %v1278_v25, %v1275_v33  ;;  %v1289_v40 = vmul.f32 %v1281_v6, %v1272_v43  ;;  %v857_v56 = vmul.f32 %v849_v32, %v846_v38  ;;  %v858_v61 = vmul.f32 %v850_v51, %v845_v58  ;;  %v1379_v32 = vld [vmem:[#allocation2 + $0x40] sm:$0xff] }
 0x282   :  { %v1315_v37 = vsel %vm582_vm12, %v1306_v47, %v2290_v9  ;;  %v1316_v13 = vsel %vm582_vm12, %v2301_v48, %v1306_v47  ;;  %v996_v33 = vperm.slane %v2196_v46, 0  ;;  %v997_v58 = vperm.slane %v2196_v46, 1  ;;  %v1378_v46 = vld [vmem:[#allocation2 + $0xb8] sm:$0xff] }
 0x283   :  { %1290 = vst [vmem:[#allocation2 + $0xd0] sm:$0xf] %v1286_v39  ;;  %v865_v54 = vrot.slane %v857_v56, 4  ;;  %v866_v50 = vrot.slane %v858_v61, 4  ;;  %v1327_v55 = vmul.f32 %v1319_v34, %v1316_v13  ;;  %v1328_v17 = vmul.f32 %v1320_v42, %v1315_v37  ;;  %v1380_v34 = vld [vmem:[#allocation2 + $0x28] sm:$0xff] }
 0x284   :  { %1293 = vst [vmem:[#allocation2 + $0xa0] sm:$0xf] %v1289_v40  ;;  %v1377_v40 = vld [vmem:[#allocation2 + $0x78] sm:$0xff]  ;;  %v1373_v13 = vld [vmem:[#allocation2 + $0x8] sm:$0xff] }
 0x285   :  { %873 = vst [vmem:[#allocation2 + $0xb0] sm:$0xf0] %v865_v54  ;;  %v1335_v60 = vrot.slane %v1327_v55, 4  ;;  %v1336_v2 = vrot.slane %v1328_v17, 4  ;;  %v808_v55 = vperm.slane %v2127_v15, 0  ;;  %v809_v17 = vperm.slane %v2127_v15, 1 }
 0x286   :  { %874 = vst [vmem:[#allocation2] sm:$0xf0] %v866_v50  ;;  %v1374_v50 = vld [vmem:[#allocation2 + $0x58] sm:$0xff] }
 0x287   :  { %1343 = vst [vmem:[#allocation2 + $0xd0] sm:$0xf0] %v1335_v60  ;;  %v1310_v5 = vpop.permute.xlu1 %1309  ;;  %v1365_v60 = vld [vmem:[#allocation2 + $0xd8] sm:$0xff] }
 0x288   :  { %1344 = vst [vmem:[#allocation2 + $0xa8] sm:$0xf0] %v1336_v2  ;;  %v1313_v7 = vsel %vm582_vm12, %v1310_v5, %v2301_v48  ;;  %v1314_v8 = vsel %vm582_vm12, %v2290_v9, %v1310_v5  ;;  %v930_v14 = vpop.permute.xlu0 %929  ;;  %v1090_v9 = vperm.slane %v2250_v27, 0  ;;  %v1362_v2 = vld [vmem:[%s2428_s4] sm:$0xf] }
 0x289   :  { %v1329_v24 = vmul.f32 %v1321_v3, %v1314_v8  ;;  %v1330_v10 = vmul.f32 %v1322_v62, %v1313_v7  ;;  %v939_v18 = vsel %vm190_vm3, %v930_v14, %v2204_v0  ;;  %v940_v12 = vsel %vm190_vm3, %v2176_v35, %v930_v14  ;;  %v1366_v62 = vld [vmem:[#allocation2 + $0x18] sm:$0xff] }
 0x28a   :  { %v951_v19 = vmul.f32 %v943_v22, %v940_v12  ;;  %v952_v20 = vmul.f32 %v944_v36, %v939_v18  ;;  %v903_v35 = vperm.slane %v2146_v63, 1 }
 0x28b   :  { %v1337_v11 = vrot.slane %v1329_v24, 4  ;;  %v1338_v30 = vrot.slane %v1330_v10, 4 }
 0x28c   :  { %v959_v48 = vrot.slane %v951_v19, 4  ;;  %v960_v1 = vrot.slane %v952_v20, 4 }
 0x28d   :  { %1345 = vst [vmem:[#allocation2 + $0x98] sm:$0xf0] %v1337_v11  ;;  %v1505_v11 = vld [vmem:[%s2423_s0 + $0x8] sm:$0xff] }
 0x28e   :  { %1346 = vst [vmem:[#allocation2 + $0xa0] sm:$0xf0] %v1338_v30  ;;  %v1383_v0 = vld [vmem:[#allocation2 + $0xd0] sm:$0xff] }
 0x28f   :  { %967 = vst [vmem:[#allocation2 + $0x50] sm:$0xf0] %v959_v48  ;;  %1422 = vmatpush.msrb.mxu0 %v1383_v0  ;;  %v1384_v41 = vld [vmem:[#allocation2 + $0xa8] sm:$0xff]  ;;  %v1077_v44 = vpop.permute.xlu1 %1076 }
 0x290   :  { %968 = vst [vmem:[#allocation2 + $0x68] sm:$0xf0] %v960_v1  ;;  %1442 = vmatpush.msrb.mxu1 %v1384_v41  ;;  %v1086_v27 = vsel %vm343_vm6, %v1077_v44, %v2255_v52  ;;  %v1087_v25 = vsel %vm343_vm6, %v2263_v53, %v1077_v44  ;;  %v889_v6 = vpop.permute.xlu0 %888 }
 0x291   :  { %v1098_v51 = vmul.f32 %v1090_v9, %v1087_v25  ;;  %v1099_v28 = vmul.f32 %v1091_v49, %v1086_v27  ;;  %v898_v63 = vsel %vm147_vm2, %v889_v6, %v2141_v23  ;;  %v899_v4 = vsel %vm147_vm2, %v2162_v31, %v889_v6  ;;  %1423 = vmatpush.msrb.mxu0 %v1379_v32  ;;  %v1381_v23 = vld [vmem:[#allocation2 + $0xc0] sm:$0xff] }
 0x292   :  { %v910_v42 = vmul.f32 %v902_v29, %v899_v4  ;;  %v911_v52 = vmul.f32 %v903_v35, %v898_v63  ;;  %1443 = vmatpush.msrb.mxu1 %v1380_v34  ;;  %v1382_v31 = vld [vmem:[#allocation2 + $0x60] sm:$0xff]  ;;  %v1504_v29 = vld [vmem:[%s2423_s0] sm:$0xff] }
 0x293   :  { %1102 = vst [vmem:[#allocation2 + $0x38] sm:$0xf] %v1098_v51 }
 0x294   :  { %1103 = vst [vmem:[#allocation2 + $0x90] sm:$0xf] %v1099_v28  ;;  %v1385_v53 = vld [vmem:[#allocation2 + $0x98] sm:$0xff] }
 0x295   :  { %914 = vst [vmem:[#allocation2 + $0x50] sm:$0xf] %v910_v42  ;;  %1462 = vmatpush.msrb.mxu2 %v1385_v53  ;;  %v1386_v43 = vld [vmem:[#allocation2 + $0xa0] sm:$0xff] }
 0x296   :  { %915 = vst [vmem:[#allocation2 + $0x68] sm:$0xf] %v911_v52  ;;  %1482 = vmatpush.msrb.mxu3 %v1386_v43 }
 0x297   :  { %v983_v38 = vpop.permute.xlu1 %982  ;;  %1463 = vmatpush.msrb.mxu2 %v1381_v23 }
 0x298   :  { %v992_v47 = vsel %vm245_vm4, %v983_v38, %v2188_v45  ;;  %v993_v39 = vsel %vm245_vm4, %v2223_v59, %v983_v38  ;;  %1483 = vmatpush.msrb.mxu3 %v1382_v31  ;;  %v1369_v45 = vld [vmem:[#allocation2 + $0x30] sm:$0xff]  ;;  %v1370_v59 = vld [vmem:[#allocation2 + $0x48] sm:$0xff] }
 0x299   :  { %v1004_v56 = vmul.f32 %v996_v33, %v993_v39  ;;  %v1005_v61 = vmul.f32 %v997_v58, %v992_v47  ;;  %1464 = vmatpush.msrb.mxu2 %v1377_v40 }
 0x29a   :  { %1484 = vmatpush.msrb.mxu3 %v1378_v46  ;;  %v1375_v37 = vld [vmem:[#allocation2 + $0x38] sm:$0xff] }
 0x29b   :  { %1008 = vst [vmem:[#allocation2 + $0x80] sm:$0xf] %v1004_v56  ;;  %1424 = vmatpush.msrb.mxu0 %v1375_v37  ;;  %v1376_v54 = vld [vmem:[#allocation2 + $0x90] sm:$0xff]  ;;  %1465 = vmatpush.msrb.mxu2 %v1373_v13 }
 0x29c   :  { %1009 = vst [vmem:[#allocation2 + $0x88] sm:$0xf] %v1005_v61  ;;  %1444 = vmatpush.msrb.mxu1 %v1376_v54  ;;  %1485 = vmatpush.msrb.mxu3 %v1374_v50  ;;  %v1367_v14 = vld [vmem:[#allocation2 + $0x50] sm:$0xff] }
 0x29d   :  { %1466 = vmatpush.msrb.mxu2 %v1369_v45 }
 0x29e   :  { %1486 = vmatpush.msrb.mxu3 %v1370_v59 }
 0x29f   :  { %v795_v3 = vpop.permute.xlu1 %794  ;;  %1467 = vmatpush.msrb.mxu2 %v1365_v60 }
 0x2a0   :  { %v804_v22 = vsel %vm50_vm0, %v795_v3, %v2315_v16  ;;  %v805_v36 = vsel %vm50_vm0, %v2130_v21, %v795_v3  ;;  %1487 = vmatpush.msrb.mxu3 %v1366_v62  ;;  %1551 = vmatmul.msk.f32.vlgmr.msrb.gmra.mxu2 %vm668_vm13, %v1362_v2  ;;  %v1368_v16 = vld [vmem:[#allocation2 + $0x68] sm:$0xff] }
 0x2a1   :  { %v816_v15 = vmul.f32 %v808_v55, %v805_v36  ;;  %v817_v5 = vmul.f32 %v809_v17, %v804_v22  ;;  %1553 = vmatmul.msk.f32.vlgmr.msrb.gmra.mxu3 %vm668_vm13, %v1362_v2 }
 0x2a2   :  { %v1371_v7 = vld [vmem:[#allocation2 + $0x80] sm:$0xff] }
 0x2a3   :  { %820 = vst [vmem:[#allocation2 + $0xb0] sm:$0xf] %v816_v15  ;;  %1425 = vmatpush.msrb.mxu0 %v1371_v7  ;;  %v1372_v8 = vld [vmem:[#allocation2 + $0x88] sm:$0xff] }
 0x2a4   :  { %821 = vst [vmem:[#allocation2] sm:$0xf] %v817_v5  ;;  %1445 = vmatpush.msrb.mxu1 %v1372_v8 }
 0x2a5   :  { %1426 = vmatpush.msrb.mxu0 %v1367_v14 }
 0x2a6   :  { %1446 = vmatpush.msrb.mxu1 %v1368_v16 }
 0x2aa   :  { %v1363_v24 = vld [vmem:[#allocation2 + $0xb0] sm:$0xff] }
 0x2ab   :  { %1427 = vmatpush.msrb.mxu0 %v1363_v24  ;;  %v1364_v57 = vld [vmem:[#allocation2] sm:$0xff] }
 0x2ac   :  { %1447 = vmatpush.msrb.mxu1 %v1364_v57  ;;  %1547 = vmatmul.msk.f32.vlgmr.msrb.gmra.mxu0 %vm668_vm13, %v1362_v2 }
 0x2ad   :  { %1549 = vmatmul.msk.f32.vlgmr.msrb.gmra.mxu1 %vm668_vm13, %v1362_v2 }
 0x2d7   :  { %v1395_v21 = vpop.permute.xlu2 %1394 }
 0x323   :  { %v1469_v10 = vpop.f32.mrf.mxu2 }
 0x324   :  { %v1489_v18 = vpop.f32.mrf.mxu3  ;;  %v1470_v19 = vadd.f32 %v1469_v10, %v1395_v21 }
 0x325   :  { %v1490_v12 = vadd.f32 %v1489_v18, %v1395_v21 }
 0x327   :  { %v1497_v20 = vrot.slane %v1490_v12, 4 }
 0x329   :  { %v1499_v30 = vsel %vm672_vm11, %v1470_v19, %v1497_v20  ;;  %v1429_v48 = vpop.f32.mrf.mxu0 }
 0x32a   :  { %v1449_v1 = vpop.f32.mrf.mxu1  ;;  %v1509_v9 = vadd.f32 %v1505_v11, %v1499_v30  ;;  %v1430_v26 = vadd.f32 %v1429_v48, %v1395_v21 }
 0x32b   :  { %v1450_v49 = vadd.f32 %v1449_v1, %v1395_v21 }
 0x32c   :  { %1511 = vst [vmem:[%s2429_s6 + $0x8] sm:$0xff] %v1509_v9 }
 0x32d   :  { %v1496_v0 = vrot.slane %v1450_v49, 4 }
 0x32f   :  { %v1498_v35 = vsel %vm672_vm11, %v1430_v26, %v1496_v0 }
 0x330   :  { %v1508_v41 = vadd.f32 %v1504_v29, %v1498_v35 }
 0x332   :  { %1510 = vst [vmem:[%s2429_s6] sm:$0xff] %v1508_v41 }

</bundles_post_ra>
